<compile_context>
chip_gen: v6e
topology: v6e:2x2x1
jax: 0.10.0
libtpu: 0.0.40
codegen_flags: <defaults>
</compile_context>

<pallas_src>
import functools

import jax
import jax.numpy as jnp
from jax.experimental import pallas as pl
from jax.experimental.pallas import tpu as pltpu


# ---------------------------------------------------------------------------
# Parameters (host-side; prepare_params is called ONCE, not per forward call).
# ---------------------------------------------------------------------------
def init_params(key, n_head, d_model, d_k, d_v):
    k1, k2, k3, k4, k5 = jax.random.split(key, 5)
    std_qk = (2.0 / (d_model + d_k)) ** 0.5
    std_v = (2.0 / (d_model + d_v)) ** 0.5
    wq = std_qk * jax.random.normal(k1, (n_head * d_k, d_model), jnp.float32)
    wk = std_qk * jax.random.normal(k2, (n_head * d_k, d_model), jnp.float32)
    wv = std_v * jax.random.normal(k3, (n_head * d_v, d_model), jnp.float32)
    # xavier_normal_ for fc weight: std = sqrt(2 / (fan_in + fan_out))
    std_fc = (2.0 / (n_head * d_v + d_model)) ** 0.5
    wo = std_fc * jax.random.normal(k4, (d_model, n_head * d_v), jnp.float32)
    bound = 1.0 / (n_head * d_v) ** 0.5
    bo = jax.random.uniform(k5, (1, d_model), jnp.float32, -bound, bound)
    gamma = jnp.ones((1, d_model), jnp.float32)
    beta = jnp.zeros((1, d_model), jnp.float32)
    return (wq, wk, wv, wo, bo, gamma, beta)


def prepare_params(params, *, n_head, d_k, d_v, compute_dtype=jnp.bfloat16):
    """One-time host-side prep: transpose, fold 1/sqrt(d_k), bf16 cast,
    head-major fc weight.  Keeps per-call wrappers free of weight reshapes."""
    wq, wk, wv, wo, bo, gamma, beta = params
    d_model = wq.shape[1]
    inv_temp = 1.0 / float(d_k) ** 0.5
    wq_t = (wq.T * inv_temp).astype(compute_dtype)            # (d_model, H*dk)
    wk_t = wk.T.astype(compute_dtype)                         # (d_model, H*dk)
    wv_t = wv.T.astype(compute_dtype)                         # (d_model, H*dv)
    # fc weight as (H, d_v, d_model): fuses the head "concat" into a batched
    # per-head contraction (no transpose/reshape of the attention output).
    wo_h = wo.T.reshape(n_head, d_v, d_model).astype(compute_dtype)
    return (wq_t, wk_t, wv_t, wo_h,
            bo.astype(jnp.float32), gamma.astype(jnp.float32),
            beta.astype(jnp.float32))


# ---------------------------------------------------------------------------
# Kernel: flash attention over Lk tiles + fused fc / residual / LayerNorm.
# ---------------------------------------------------------------------------
def _mha_attn_kernel(resid_ref, qh_ref, kh_ref, vh_ref, wo_ref, bo_ref,
                     gamma_ref, beta_ref, o_ref,
                     m_scr, l_scr, acc_scr,
                     *, lk_valid, lk_pad, k_tile, eps):
    kt = pl.program_id(2)

    @pl.when(kt == 0)
    def _init():
        m_scr[...] = jnp.full_like(m_scr, -1e30)
        l_scr[...] = jnp.zeros_like(l_scr)
        acc_scr[...] = jnp.zeros_like(acc_scr)

    # Scores for all heads at once (bf16 operands, f32 accumulation);
    # 1/sqrt(d_k) is already folded into the Q projection.
    s = jnp.einsum('hqd,hkd->hqk', qh_ref[...], kh_ref[...],
                   preferred_element_type=jnp.float32)         # (H, TQ, TK) f32

    if lk_pad != lk_valid:   # static branch: mask zero-padded keys only if any
        col = kt * k_tile + jax.lax.broadcasted_iota(jnp.int32, s.shape, 2)
        s = jnp.where(col < lk_valid, s, -1e30)

    # Online softmax update (never materializes the full (H, TQ, Lk) tensor).
    m_prev = m_scr[...]
    m_new = jnp.maximum(m_prev, jnp.max(s, axis=-1, keepdims=True))
    alpha = jnp.exp(m_prev - m_new)
    p = jnp.exp(s - m_new)
    l_scr[...] = alpha * l_scr[...] + jnp.sum(p, axis=-1, keepdims=True)
    acc_scr[...] = alpha * acc_scr[...] + jnp.einsum(
        'hqk,hkd->hqd', p.astype(vh_ref.dtype), vh_ref[...],
        preferred_element_type=jnp.float32)
    m_scr[...] = m_new
    # TODO(synk): attention dropout / output dropout skipped (eval-mode
    # identity); log_softmax of ScaledDotProductAttention is unused by the
    # module's returned output, so it is not materialized.

    @pl.when(kt == pl.num_programs(2) - 1)
    def _finalize():
        out = acc_scr[...] * pl.reciprocal(l_scr[...], approx=True)  # (H,TQ,dv)
        # Fused fc: per-head (TQ,dv)x(dv,d_model) batched contraction + sum
        # over heads == concat(heads) @ Wo^T, without the transpose/reshape.
        per_head = jnp.einsum('hqd,hdm->hqm', out.astype(wo_ref.dtype),
                              wo_ref[...], preferred_element_type=jnp.float32)
        proj = jnp.sum(per_head, axis=0) + bo_ref[0, :]
        x = proj + resid_ref[...]                 # residual (f32)
        mu = jnp.mean(x, axis=-1, keepdims=True)
        var = jnp.mean((x - mu) * (x - mu), axis=-1, keepdims=True)
        y = (x - mu) * jax.lax.rsqrt(var + eps)
        o_ref[...] = (y * gamma_ref[0, :] + beta_ref[0, :]).astype(o_ref.dtype)


# ---------------------------------------------------------------------------
# Wrapper
# ---------------------------------------------------------------------------
def _pad_axis(x, axis, target):
    pad = target - x.shape[axis]
    if pad <= 0:
        return x
    widths = [(0, 0)] * x.ndim
    widths[axis] = (0, pad)
    return jnp.pad(x, widths)


def multi_head_attention(q, k, v, prepared_params, *, n_head, d_k, d_v,
                         q_tile=256, k_tile=512, compute_dtype=jnp.bfloat16):
    """q, k, v: (B, L, d_model) float32.  prepared_params from prepare_params()."""
    wq_t, wk_t, wv_t, wo_h, bo, gamma, beta = prepared_params
    B, Lq, d_model = q.shape
    _, Lk, _ = k.shape
    assert v.shape[1] == Lk, "attention requires len_k == len_v"

    cd = compute_dtype
    # Hoisted projections (once per call, plain XLA), head-major, bf16:
    # the kernel never re-projects K/V per q-tile and never relayouts heads.
    qh = (q.astype(cd) @ wq_t).reshape(B, Lq, n_head, d_k).transpose(0, 2, 1, 3)
    kh = (k.astype(cd) @ wk_t).reshape(B, Lk, n_head, d_k).transpose(0, 2, 1, 3)
    vh = (v.astype(cd) @ wv_t).reshape(B, Lk, n_head, d_v).transpose(0, 2, 1, 3)

    # cdiv-based tiling + zero padding (no single-whole-sequence fallback), so
    # the grid always has B * ceil(Lq/tq) independent steps for pipelining /
    # megacore sharding.  q_tile default 256 suits v6e/v7x; sweep 128-256 on v5e.
    tq = q_tile if Lq > q_tile else Lq
    tk = k_tile if Lk > k_tile else Lk
    nq = pl.cdiv(Lq, tq)
    nk = pl.cdiv(Lk, tk)
    lq_pad = nq * tq
    lk_pad = nk * tk

    q_res = _pad_axis(q, 1, lq_pad)           # f32 residual path
    qh = _pad_axis(qh, 2, lq_pad)
    kh = _pad_axis(kh, 2, lk_pad)
    vh = _pad_axis(vh, 2, lk_pad)

    grid = (B, nq, nk)
    kernel = functools.partial(_mha_attn_kernel, lk_valid=Lk, lk_pad=lk_pad,
                               k_tile=tk, eps=1e-5)

    # NOTE: for production configs keep d_model and H*d_k / H*d_v multiples of
    # 128 (lane-dense stores); the toy config uses full-dim blocks so it still
    # lowers correctly, just without lane-dense vst.
    def run(single_buffer_consts):
        if single_buffer_consts:
            # Grid-invariant blocks: one VMEM buffer is enough (saves VMEM).
            const = lambda shape, imap: pl.BlockSpec(
                shape, imap, pipeline_mode=pl.Buffered(1))
        else:
            const = pl.BlockSpec
        in_specs = [
            pl.BlockSpec((None, tq, d_model), lambda b, i, kt: (b, i, 0)),        # residual q (f32)
            pl.BlockSpec((None, n_head, tq, d_k), lambda b, i, kt: (b, 0, i, 0)),  # Q heads (bf16)
            pl.BlockSpec((None, n_head, tk, d_k), lambda b, i, kt: (b, 0, kt, 0)), # K heads (bf16)
            pl.BlockSpec((None, n_head, tk, d_v), lambda b, i, kt: (b, 0, kt, 0)), # V heads (bf16)
            const((n_head, d_v, d_model), lambda b, i, kt: (0, 0, 0)),             # fc weight
            const((1, d_model), lambda b, i, kt: (0, 0)),                          # fc bias
            const((1, d_model), lambda b, i, kt: (0, 0)),                          # LN gamma
            const((1, d_model), lambda b, i, kt: (0, 0)),                          # LN beta
        ]
        out = pl.pallas_call(
            kernel,
            out_shape=jax.ShapeDtypeStruct((B, lq_pad, d_model), jnp.float32),
            grid=grid,
            in_specs=in_specs,
            out_specs=pl.BlockSpec((None, tq, d_model), lambda b, i, kt: (b, i, 0)),
            scratch_shapes=[
                pltpu.VMEM((n_head, tq, 1), jnp.float32),    # running max  m
                pltpu.VMEM((n_head, tq, 1), jnp.float32),    # running denom l
                pltpu.VMEM((n_head, tq, d_v), jnp.float32),  # output accumulator
            ],
            compiler_params=pltpu.CompilerParams(
                dimension_semantics=("parallel", "parallel", "arbitrary"),
                vmem_limit_bytes=48 * 1024 * 1024),
        )(q_res, qh, kh, vh, wo_h, bo, gamma, beta)
        return jax.block_until_ready(out)

    try:
        out = run(True)
    except Exception:  # pl.Buffered(1) unsupported on this Pallas version -> default buffering
        out = run(False)

    if lq_pad != Lq:
        out = out[:, :Lq, :]
    return out


# ---------------------------------------------------------------------------
# Pure-JAX f32 reference mirroring the PyTorch forward (eval mode).
# ---------------------------------------------------------------------------
def reference_mha(q, k, v, params, *, n_head, d_k, d_v):
    wq, wk, wv, wo, bo, gamma, beta = params
    B, Lq, d_model = q.shape
    Lk = k.shape[1]
    residual = q
    qp = (q @ wq.T).reshape(B, Lq, n_head, d_k).transpose(2, 0, 1, 3)
    kp = (k @ wk.T).reshape(B, Lk, n_head, d_k).transpose(2, 0, 1, 3)
    vp = (v @ wv.T).reshape(B, Lk, n_head, d_v).transpose(2, 0, 1, 3)
    attn = jnp.einsum("hbqd,hbkd->hbqk", qp, kp) / (d_k ** 0.5)
    attn = jax.nn.softmax(attn, axis=-1)
    out = jnp.einsum("hbqk,hbkd->hbqd", attn, vp)
    out = out.transpose(1, 2, 0, 3).reshape(B, Lq, n_head * d_v)
    out = out @ wo.T + bo[0]
    x = out + residual
    mu = x.mean(-1, keepdims=True)
    var = ((x - mu) ** 2).mean(-1, keepdims=True)
    return (x - mu) / jnp.sqrt(var + 1e-5) * gamma[0] + beta[0]


if __name__ == "__main__":
    # Case 1: small shapes consistent with the module (single k tile).
    B, L, d_model = 2, 8, 32
    n_head, d_k, d_v = 2, 16, 16

    key = jax.random.PRNGKey(0)
    kp, kq, kk, kv = jax.random.split(key, 4)
    params = init_params(kp, n_head, d_model, d_k, d_v)
    prepared = prepare_params(params, n_head=n_head, d_k=d_k, d_v=d_v)

    q = jax.random.normal(kq, (B, L, d_model), jnp.float32)
    k = jax.random.normal(kk, (B, L, d_model), jnp.float32)
    v = jax.random.normal(kv, (B, L, d_model), jnp.float32)

    out = multi_head_attention(q, k, v, prepared, n_head=n_head, d_k=d_k, d_v=d_v)
    out = jax.block_until_ready(out)
    ref = reference_mha(q, k, v, params, n_head=n_head, d_k=d_k, d_v=d_v)
    assert out.shape == (B, L, d_model)
    # Tolerance reflects bf16 MXU operands (f32 accumulation) + approx reciprocal.
    assert jnp.allclose(out, ref, atol=5e-2, rtol=5e-2), "case 1 mismatch vs reference"

    # Case 2: ragged lengths (Lq=20, Lk=12 with 8-wide tiles) to exercise the
    # flash Lk tiling, q-tile padding, and in-kernel key masking.
    Lq2, Lk2 = 20, 12
    kq2, kk2, kv2 = jax.random.split(jax.random.PRNGKey(1), 3)
    q2 = jax.random.normal(kq2, (B, Lq2, d_model), jnp.float32)
    k2 = jax.random.normal(kk2, (B, Lk2, d_model), jnp.float32)
    v2 = jax.random.normal(kv2, (B, Lk2, d_model), jnp.float32)
    out2 = multi_head_attention(q2, k2, v2, prepared, n_head=n_head, d_k=d_k,
                                d_v=d_v, q_tile=8, k_tile=8)
    out2 = jax.block_until_ready(out2)
    ref2 = reference_mha(q2, k2, v2, params, n_head=n_head, d_k=d_k, d_v=d_v)
    assert out2.shape == (B, Lq2, d_model)
    assert jnp.allclose(out2, ref2, atol=5e-2, rtol=5e-2), "case 2 mismatch vs reference"

    print("KERNEL_OK")
</pallas_src>

<mosaic_0001>
module attributes {stable_mosaic.version = 11 : i64} {
  func.func @_mha_attn_kernel(%arg0: i32, %arg1: i32, %arg2: i32, %arg3: memref<1x8x32xf32, #tpu.memory_space<vmem>>, %arg4: memref<1x2x8x16xbf16, #tpu.memory_space<vmem>>, %arg5: memref<1x2x8x16xbf16, #tpu.memory_space<vmem>>, %arg6: memref<1x2x8x16xbf16, #tpu.memory_space<vmem>>, %arg7: memref<2x16x32xbf16, #tpu.memory_space<vmem>>, %arg8: memref<1x32xf32, #tpu.memory_space<vmem>>, %arg9: memref<1x32xf32, #tpu.memory_space<vmem>>, %arg10: memref<1x32xf32, #tpu.memory_space<vmem>>, %arg11: memref<1x8x32xf32, #tpu.memory_space<vmem>>, %arg12: memref<2x8x1xf32, #tpu.memory_space<vmem>>, %arg13: memref<2x8x1xf32, #tpu.memory_space<vmem>>, %arg14: memref<2x8x16xf32, #tpu.memory_space<vmem>>) attributes {dimension_semantics = [#tpu.dimension_semantics<parallel>, #tpu.dimension_semantics<parallel>, #tpu.dimension_semantics<arbitrary>], iteration_bounds = array<i64: 2, 1, 1>, scalar_prefetch = 0 : i64, scratch_operands = 3 : i64, tpu.core_type = #tpu.core_type<tc>, window_params = [{transform_indices = @transform_0, window_bounds = array<i64: 1, 8, 32>}, {transform_indices = @transform_1, window_bounds = array<i64: 1, 2, 8, 16>}, {transform_indices = @transform_2, window_bounds = array<i64: 1, 2, 8, 16>}, {transform_indices = @transform_3, window_bounds = array<i64: 1, 2, 8, 16>}, {pipeline_mode = #tpu.pipeline_mode<synchronous>, transform_indices = @transform_4, window_bounds = array<i64: 2, 16, 32>}, {pipeline_mode = #tpu.pipeline_mode<synchronous>, transform_indices = @transform_5, window_bounds = array<i64: 1, 32>}, {pipeline_mode = #tpu.pipeline_mode<synchronous>, transform_indices = @transform_6, window_bounds = array<i64: 1, 32>}, {pipeline_mode = #tpu.pipeline_mode<synchronous>, transform_indices = @transform_7, window_bounds = array<i64: 1, 32>}, {transform_indices = @transform_8, window_bounds = array<i64: 1, 8, 32>}]} {
    %c0_i32 = arith.constant 0 : i32
    %0 = arith.cmpi eq, %arg2, %c0_i32 : i32
    %1 = arith.extui %0 : i1 to i32
    %c0_i32_0 = arith.constant 0 : i32
    %2 = arith.cmpi ne, %1, %c0_i32_0 : i32
    scf.if %2 {
      %cst_35 = arith.constant -1.000000e+30 : f32
      %36 = vector.broadcast %cst_35 : f32 to vector<2x8x1xf32>
      %c0_36 = arith.constant 0 : index
      %c0_37 = arith.constant 0 : index
      %c0_38 = arith.constant 0 : index
      %37 = vector.load %arg12[%c0_36, %c0_37, %c0_38] : memref<2x8x1xf32, #tpu.memory_space<vmem>>, vector<2x8x1xf32>
      tpu.vector_store %arg12[%c0_36, %c0_37, %c0_38], %36 {strides = array<i32>} : memref<2x8x1xf32, #tpu.memory_space<vmem>>, vector<2x8x1xf32>,
      %cst_39 = arith.constant 0.000000e+00 : f32
      %38 = vector.broadcast %cst_39 : f32 to vector<2x8x1xf32>
      %c0_40 = arith.constant 0 : index
      %c0_41 = arith.constant 0 : index
      %c0_42 = arith.constant 0 : index
      %39 = vector.load %arg13[%c0_40, %c0_41, %c0_42] : memref<2x8x1xf32, #tpu.memory_space<vmem>>, vector<2x8x1xf32>
      tpu.vector_store %arg13[%c0_40, %c0_41, %c0_42], %38 {strides = array<i32>} : memref<2x8x1xf32, #tpu.memory_space<vmem>>, vector<2x8x1xf32>,
      %cst_43 = arith.constant 0.000000e+00 : f32
      %40 = vector.broadcast %cst_43 : f32 to vector<2x8x16xf32>
      %c0_44 = arith.constant 0 : index
      %c0_45 = arith.constant 0 : index
      %c0_46 = arith.constant 0 : index
      %41 = vector.load %arg14[%c0_44, %c0_45, %c0_46] : memref<2x8x16xf32, #tpu.memory_space<vmem>>, vector<2x8x16xf32>
      tpu.vector_store %arg14[%c0_44, %c0_45, %c0_46], %40 {strides = array<i32>} : memref<2x8x16xf32, #tpu.memory_space<vmem>>, vector<2x8x16xf32>,
    } else {
    }
    %c0 = arith.constant 0 : index
    %c0_1 = arith.constant 0 : index
    %c0_2 = arith.constant 0 : index
    %c0_3 = arith.constant 0 : index
    %3 = vector.load %arg4[%c0, %c0_1, %c0_2, %c0_3] : memref<1x2x8x16xbf16, #tpu.memory_space<vmem>>, vector<1x2x8x16xbf16>
    %4 = vector.shape_cast %3 : vector<1x2x8x16xbf16> to vector<2x8x16xbf16>
    %c0_4 = arith.constant 0 : index
    %c0_5 = arith.constant 0 : index
    %c0_6 = arith.constant 0 : index
    %c0_7 = arith.constant 0 : index
    %5 = vector.load %arg5[%c0_4, %c0_5, %c0_6, %c0_7] : memref<1x2x8x16xbf16, #tpu.memory_space<vmem>>, vector<1x2x8x16xbf16>
    %6 = vector.shape_cast %5 : vector<1x2x8x16xbf16> to vector<2x8x16xbf16>
    "tpu.trace_start"() <{level = 10 : i32, message = "hqd,hkd->hqk"}> : () -> ()
    %cst = arith.constant dense<0.000000e+00> : vector<2x8x8xf32>
    %7 = tpu.matmul %4, %6, %cst {dimension_numbers = #tpu.dot_dimension_numbers<[2], [2], [1], [1], [0, 0, 0, 1, 1, 1], [0], [0]>} : vector<2x8x16xbf16>, vector<2x8x16xbf16>, vector<2x8x8xf32> -> vector<2x8x8xf32>
    "tpu.trace_stop"() : () -> ()
    %c0_8 = arith.constant 0 : index
    %c0_9 = arith.constant 0 : index
    %c0_10 = arith.constant 0 : index
    %8 = vector.load %arg12[%c0_8, %c0_9, %c0_10] : memref<2x8x1xf32, #tpu.memory_space<vmem>>, vector<2x8x1xf32>
    %cst_11 = arith.constant dense<0xFF800000> : vector<2x8xf32>
    %9 = vector.multi_reduction <maximumf>, %7, %cst_11 [2] : vector<2x8x8xf32> to vector<2x8xf32>
    %10 = vector.shape_cast %9 : vector<2x8xf32> to vector<2x8x1xf32>
    %11 = arith.maximumf %8, %10 : vector<2x8x1xf32>
    %12 = arith.subf %8, %11 : vector<2x8x1xf32>
    %13 = math.exp %12 : vector<2x8x1xf32>
    %14 = vector.broadcast %11 : vector<2x8x1xf32> to vector<2x8x8xf32>
    %15 = arith.subf %7, %14 : vector<2x8x8xf32>
    %16 = math.exp %15 : vector<2x8x8xf32>
    %c0_12 = arith.constant 0 : index
    %c0_13 = arith.constant 0 : index
    %c0_14 = arith.constant 0 : index
    %17 = vector.load %arg13[%c0_12, %c0_13, %c0_14] : memref<2x8x1xf32, #tpu.memory_space<vmem>>, vector<2x8x1xf32>
    %18 = arith.mulf %13, %17 : vector<2x8x1xf32>
    %cst_15 = arith.constant dense<0.000000e+00> : vector<2x8xf32>
    %19 = vector.multi_reduction <add>, %16, %cst_15 [2] : vector<2x8x8xf32> to vector<2x8xf32>
    %20 = vector.shape_cast %19 : vector<2x8xf32> to vector<2x8x1xf32>
    %21 = arith.addf %18, %20 : vector<2x8x1xf32>
    %c0_16 = arith.constant 0 : index
    %c0_17 = arith.constant 0 : index
    %c0_18 = arith.constant 0 : index
    %22 = vector.load %arg13[%c0_16, %c0_17, %c0_18] : memref<2x8x1xf32, #tpu.memory_space<vmem>>, vector<2x8x1xf32>
    tpu.vector_store %arg13[%c0_16, %c0_17, %c0_18], %21 {strides = array<i32>} : memref<2x8x1xf32, #tpu.memory_space<vmem>>, vector<2x8x1xf32>,
    %c0_19 = arith.constant 0 : index
    %c0_20 = arith.constant 0 : index
    %c0_21 = arith.constant 0 : index
    %23 = vector.load %arg14[%c0_19, %c0_20, %c0_21] : memref<2x8x16xf32, #tpu.memory_space<vmem>>, vector<2x8x16xf32>
    %24 = vector.broadcast %13 : vector<2x8x1xf32> to vector<2x8x16xf32>
    %25 = arith.mulf %24, %23 : vector<2x8x16xf32>
    %26 = arith.truncf %16 : vector<2x8x8xf32> to vector<2x8x8xbf16>
    %c0_22 = arith.constant 0 : index
    %c0_23 = arith.constant 0 : index
    %c0_24 = arith.constant 0 : index
    %c0_25 = arith.constant 0 : index
    %27 = vector.load %arg6[%c0_22, %c0_23, %c0_24, %c0_25] : memref<1x2x8x16xbf16, #tpu.memory_space<vmem>>, vector<1x2x8x16xbf16>
    %28 = vector.shape_cast %27 : vector<1x2x8x16xbf16> to vector<2x8x16xbf16>
    "tpu.trace_start"() <{level = 10 : i32, message = "hqk,hkd->hqd"}> : () -> ()
    %cst_26 = arith.constant dense<0.000000e+00> : vector<2x8x16xf32>
    %29 = tpu.matmul %26, %28, %cst_26 {dimension_numbers = #tpu.dot_dimension_numbers<[2], [1], [1], [2], [0, 0, 0, 1, 1, 2], [0], [0]>} : vector<2x8x8xbf16>, vector<2x8x16xbf16>, vector<2x8x16xf32> -> vector<2x8x16xf32>
    "tpu.trace_stop"() : () -> ()
    %30 = arith.addf %25, %29 : vector<2x8x16xf32>
    %c0_27 = arith.constant 0 : index
    %c0_28 = arith.constant 0 : index
    %c0_29 = arith.constant 0 : index
    %31 = vector.load %arg14[%c0_27, %c0_28, %c0_29] : memref<2x8x16xf32, #tpu.memory_space<vmem>>, vector<2x8x16xf32>
    tpu.vector_store %arg14[%c0_27, %c0_28, %c0_29], %30 {strides = array<i32>} : memref<2x8x16xf32, #tpu.memory_space<vmem>>, vector<2x8x16xf32>,
    %c0_30 = arith.constant 0 : index
    %c0_31 = arith.constant 0 : index
    %c0_32 = arith.constant 0 : index
    %32 = vector.load %arg12[%c0_30, %c0_31, %c0_32] : memref<2x8x1xf32, #tpu.memory_space<vmem>>, vector<2x8x1xf32>
    tpu.vector_store %arg12[%c0_30, %c0_31, %c0_32], %11 {strides = array<i32>} : memref<2x8x1xf32, #tpu.memory_space<vmem>>, vector<2x8x1xf32>,
    %c0_i32_33 = arith.constant 0 : i32
    %33 = arith.cmpi eq, %arg2, %c0_i32_33 : i32
    %34 = arith.extui %33 : i1 to i32
    %c0_i32_34 = arith.constant 0 : i32
    %35 = arith.cmpi ne, %34, %c0_i32_34 : i32
    scf.if %35 {
      %c0_35 = arith.constant 0 : index
      %c0_36 = arith.constant 0 : index
      %c0_37 = arith.constant 0 : index
      %36 = vector.load %arg14[%c0_35, %c0_36, %c0_37] : memref<2x8x16xf32, #tpu.memory_space<vmem>>, vector<2x8x16xf32>
      %c0_38 = arith.constant 0 : index
      %c0_39 = arith.constant 0 : index
      %c0_40 = arith.constant 0 : index
      %37 = vector.load %arg13[%c0_38, %c0_39, %c0_40] : memref<2x8x1xf32, #tpu.memory_space<vmem>>, vector<2x8x1xf32>
      %38 = tpu.reciprocal %37 {approx = true} : vector<2x8x1xf32> -> vector<2x8x1xf32>
      %39 = vector.broadcast %38 : vector<2x8x1xf32> to vector<2x8x16xf32>
      %40 = arith.mulf %36, %39 : vector<2x8x16xf32>
      %41 = arith.truncf %40 : vector<2x8x16xf32> to vector<2x8x16xbf16>
      %c0_41 = arith.constant 0 : index
      %c0_42 = arith.constant 0 : index
      %c0_43 = arith.constant 0 : index
      %42 = vector.load %arg7[%c0_41, %c0_42, %c0_43] : memref<2x16x32xbf16, #tpu.memory_space<vmem>>, vector<2x16x32xbf16>
      "tpu.trace_start"() <{level = 10 : i32, message = "hqd,hdm->hqm"}> : () -> ()
      %cst_44 = arith.constant dense<0.000000e+00> : vector<2x8x32xf32>
      %43 = tpu.matmul %41, %42, %cst_44 {dimension_numbers = #tpu.dot_dimension_numbers<[2], [1], [1], [2], [0, 0, 0, 1, 1, 2], [0], [0]>} : vector<2x8x16xbf16>, vector<2x16x32xbf16>, vector<2x8x32xf32> -> vector<2x8x32xf32>
      "tpu.trace_stop"() : () -> ()
      %cst_45 = arith.constant dense<0.000000e+00> : vector<8x32xf32>
      %44 = vector.multi_reduction <add>, %43, %cst_45 [0] : vector<2x8x32xf32> to vector<8x32xf32>
      %c0_46 = arith.constant 0 : index
      %c0_47 = arith.constant 0 : index
      %45 = vector.load %arg8[%c0_46, %c0_47] : memref<1x32xf32, #tpu.memory_space<vmem>>, vector<1x32xf32>
      %46 = vector.shape_cast %45 : vector<1x32xf32> to vector<32xf32>
      %47 = vector.shape_cast %46 : vector<32xf32> to vector<1x32xf32>
      %48 = vector.broadcast %47 : vector<1x32xf32> to vector<8x32xf32>
      %49 = arith.addf %44, %48 : vector<8x32xf32>
      %c0_48 = arith.constant 0 : index
      %c0_49 = arith.constant 0 : index
      %c0_50 = arith.constant 0 : index
      %50 = vector.load %arg3[%c0_48, %c0_49, %c0_50] : memref<1x8x32xf32, #tpu.memory_space<vmem>>, vector<1x8x32xf32>
      %51 = vector.shape_cast %50 : vector<1x8x32xf32> to vector<8x32xf32>
      %52 = arith.addf %49, %51 : vector<8x32xf32>
      %cst_51 = arith.constant dense<0.000000e+00> : vector<8xf32>
      %53 = vector.multi_reduction <add>, %52, %cst_51 [1] : vector<8x32xf32> to vector<8xf32>
      %54 = vector.shape_cast %53 : vector<8xf32> to vector<8x1xf32>
      %cst_52 = arith.constant 3.200000e+01 : f32
      %55 = vector.broadcast %cst_52 : f32 to vector<8x1xf32>
      %56 = arith.divf %54, %55 : vector<8x1xf32>
      %57 = vector.broadcast %56 : vector<8x1xf32> to vector<8x32xf32>
      %58 = arith.subf %52, %57 : vector<8x32xf32>
      %59 = vector.broadcast %56 : vector<8x1xf32> to vector<8x32xf32>
      %60 = arith.subf %52, %59 : vector<8x32xf32>
      %61 = arith.mulf %58, %60 : vector<8x32xf32>
      %cst_53 = arith.constant dense<0.000000e+00> : vector<8xf32>
      %62 = vector.multi_reduction <add>, %61, %cst_53 [1] : vector<8x32xf32> to vector<8xf32>
      %63 = vector.shape_cast %62 : vector<8xf32> to vector<8x1xf32>
      %cst_54 = arith.constant 3.200000e+01 : f32
      %64 = vector.broadcast %cst_54 : f32 to vector<8x1xf32>
      %65 = arith.divf %63, %64 : vector<8x1xf32>
      %66 = vector.broadcast %56 : vector<8x1xf32> to vector<8x32xf32>
      %67 = arith.subf %52, %66 : vector<8x32xf32>
      %cst_55 = arith.constant 9.99999974E-6 : f32
      %68 = vector.broadcast %cst_55 : f32 to vector<8x1xf32>
      %69 = arith.addf %65, %68 : vector<8x1xf32>
      %70 = math.rsqrt %69 : vector<8x1xf32>
      %71 = vector.broadcast %70 : vector<8x1xf32> to vector<8x32xf32>
      %72 = arith.mulf %67, %71 : vector<8x32xf32>
      %c0_56 = arith.constant 0 : index
      %c0_57 = arith.constant 0 : index
      %73 = vector.load %arg9[%c0_56, %c0_57] : memref<1x32xf32, #tpu.memory_space<vmem>>, vector<1x32xf32>
      %74 = vector.shape_cast %73 : vector<1x32xf32> to vector<32xf32>
      %75 = vector.shape_cast %74 : vector<32xf32> to vector<1x32xf32>
      %76 = vector.broadcast %75 : vector<1x32xf32> to vector<8x32xf32>
      %77 = arith.mulf %72, %76 : vector<8x32xf32>
      %c0_58 = arith.constant 0 : index
      %c0_59 = arith.constant 0 : index
      %78 = vector.load %arg10[%c0_58, %c0_59] : memref<1x32xf32, #tpu.memory_space<vmem>>, vector<1x32xf32>
      %79 = vector.shape_cast %78 : vector<1x32xf32> to vector<32xf32>
      %80 = vector.shape_cast %79 : vector<32xf32> to vector<1x32xf32>
      %81 = vector.broadcast %80 : vector<1x32xf32> to vector<8x32xf32>
      %82 = arith.addf %77, %81 : vector<8x32xf32>
      %c0_60 = arith.constant 0 : index
      %c0_61 = arith.constant 0 : index
      %c0_62 = arith.constant 0 : index
      %83 = vector.load %arg11[%c0_60, %c0_61, %c0_62] : memref<1x8x32xf32, #tpu.memory_space<vmem>>, vector<1x8x32xf32>
      %84 = vector.shape_cast %83 : vector<1x8x32xf32> to vector<8x32xf32>
      %85 = vector.shape_cast %82 : vector<8x32xf32> to vector<1x8x32xf32>
      tpu.vector_store %arg11[%c0_60, %c0_61, %c0_62], %85 {strides = array<i32>} : memref<1x8x32xf32, #tpu.memory_space<vmem>>, vector<1x8x32xf32>,
    } else {
    }
    return
  }
  func.func @transform_0(%arg0: i32, %arg1: i32, %arg2: i32) -> (i32, i32, i32) {
    %c0_i32 = arith.constant 0 : i32
    %c0_i32_0 = arith.constant 0 : i32
    return %arg0, %arg1, %c0_i32 : i32, i32, i32
  }
  func.func @transform_1(%arg0: i32, %arg1: i32, %arg2: i32) -> (i32, i32, i32, i32) {
    %c0_i32 = arith.constant 0 : i32
    %c0_i32_0 = arith.constant 0 : i32
    %c0_i32_1 = arith.constant 0 : i32
    return %arg0, %c0_i32, %arg1, %c0_i32_0 : i32, i32, i32, i32
  }
  func.func @transform_2(%arg0: i32, %arg1: i32, %arg2: i32) -> (i32, i32, i32, i32) {
    %c0_i32 = arith.constant 0 : i32
    %c0_i32_0 = arith.constant 0 : i32
    %c0_i32_1 = arith.constant 0 : i32
    return %arg0, %c0_i32, %arg2, %c0_i32_0 : i32, i32, i32, i32
  }
  func.func @transform_3(%arg0: i32, %arg1: i32, %arg2: i32) -> (i32, i32, i32, i32) {
    %c0_i32 = arith.constant 0 : i32
    %c0_i32_0 = arith.constant 0 : i32
    %c0_i32_1 = arith.constant 0 : i32
    return %arg0, %c0_i32, %arg2, %c0_i32_0 : i32, i32, i32, i32
  }
  func.func @transform_4(%arg0: i32, %arg1: i32, %arg2: i32) -> (i32, i32, i32) {
    %c0_i32 = arith.constant 0 : i32
    %c0_i32_0 = arith.constant 0 : i32
    %c0_i32_1 = arith.constant 0 : i32
    %c0_i32_2 = arith.constant 0 : i32
    return %c0_i32, %c0_i32_0, %c0_i32_1 : i32, i32, i32
  }
  func.func @transform_5(%arg0: i32, %arg1: i32, %arg2: i32) -> (i32, i32) {
    %c0_i32 = arith.constant 0 : i32
    %c0_i32_0 = arith.constant 0 : i32
    %c0_i32_1 = arith.constant 0 : i32
    return %c0_i32, %c0_i32_0 : i32, i32
  }
  func.func @transform_6(%arg0: i32, %arg1: i32, %arg2: i32) -> (i32, i32) {
    %c0_i32 = arith.constant 0 : i32
    %c0_i32_0 = arith.constant 0 : i32
    %c0_i32_1 = arith.constant 0 : i32
    return %c0_i32, %c0_i32_0 : i32, i32
  }
  func.func @transform_7(%arg0: i32, %arg1: i32, %arg2: i32) -> (i32, i32) {
    %c0_i32 = arith.constant 0 : i32
    %c0_i32_0 = arith.constant 0 : i32
    %c0_i32_1 = arith.constant 0 : i32
    return %c0_i32, %c0_i32_0 : i32, i32
  }
  func.func @transform_8(%arg0: i32, %arg1: i32, %arg2: i32) -> (i32, i32, i32) {
    %c0_i32 = arith.constant 0 : i32
    %c0_i32_0 = arith.constant 0 : i32
    return %arg0, %arg1, %c0_i32 : i32, i32, i32
  }
}

module attributes {stable_mosaic.version = 11 : i64} {
  func.func @_mha_attn_kernel(%arg0: i32, %arg1: i32, %arg2: i32, %arg3: memref<1x8x32xf32, #tpu.memory_space<vmem>>, %arg4: memref<1x2x8x16xbf16, #tpu.memory_space<vmem>>, %arg5: memref<1x2x8x16xbf16, #tpu.memory_space<vmem>>, %arg6: memref<1x2x8x16xbf16, #tpu.memory_space<vmem>>, %arg7: memref<2x16x32xbf16, #tpu.memory_space<vmem>>, %arg8: memref<1x32xf32, #tpu.memory_space<vmem>>, %arg9: memref<1x32xf32, #tpu.memory_space<vmem>>, %arg10: memref<1x32xf32, #tpu.memory_space<vmem>>, %arg11: memref<1x8x32xf32, #tpu.memory_space<vmem>>, %arg12: memref<2x8x1xf32, #tpu.memory_space<vmem>>, %arg13: memref<2x8x1xf32, #tpu.memory_space<vmem>>, %arg14: memref<2x8x16xf32, #tpu.memory_space<vmem>>) attributes {dimension_semantics = [#tpu.dimension_semantics<parallel>, #tpu.dimension_semantics<parallel>, #tpu.dimension_semantics<arbitrary>], iteration_bounds = array<i64: 2, 1, 1>, scalar_prefetch = 0 : i64, scratch_operands = 3 : i64, tpu.core_type = #tpu.core_type<tc>, window_params = [{transform_indices = @transform_0, window_bounds = array<i64: 1, 8, 32>}, {transform_indices = @transform_1, window_bounds = array<i64: 1, 2, 8, 16>}, {transform_indices = @transform_2, window_bounds = array<i64: 1, 2, 8, 16>}, {transform_indices = @transform_3, window_bounds = array<i64: 1, 2, 8, 16>}, {pipeline_mode = #tpu.pipeline_mode<synchronous>, transform_indices = @transform_4, window_bounds = array<i64: 2, 16, 32>}, {pipeline_mode = #tpu.pipeline_mode<synchronous>, transform_indices = @transform_5, window_bounds = array<i64: 1, 32>}, {pipeline_mode = #tpu.pipeline_mode<synchronous>, transform_indices = @transform_6, window_bounds = array<i64: 1, 32>}, {pipeline_mode = #tpu.pipeline_mode<synchronous>, transform_indices = @transform_7, window_bounds = array<i64: 1, 32>}, {transform_indices = @transform_8, window_bounds = array<i64: 1, 8, 32>}]} {
    %c0_i32 = arith.constant 0 : i32
    %0 = arith.cmpi eq, %arg2, %c0_i32 : i32
    %1 = arith.extui %0 : i1 to i32
    %c0_i32_0 = arith.constant 0 : i32
    %2 = arith.cmpi ne, %1, %c0_i32_0 : i32
    scf.if %2 {
      %cst_35 = arith.constant -1.000000e+30 : f32
      %36 = vector.broadcast %cst_35 : f32 to vector<2x8x1xf32>
      %c0_36 = arith.constant 0 : index
      %c0_37 = arith.constant 0 : index
      %c0_38 = arith.constant 0 : index
      %37 = vector.load %arg12[%c0_36, %c0_37, %c0_38] : memref<2x8x1xf32, #tpu.memory_space<vmem>>, vector<2x8x1xf32>
      tpu.vector_store %arg12[%c0_36, %c0_37, %c0_38], %36 {strides = array<i32>} : memref<2x8x1xf32, #tpu.memory_space<vmem>>, vector<2x8x1xf32>,
      %cst_39 = arith.constant 0.000000e+00 : f32
      %38 = vector.broadcast %cst_39 : f32 to vector<2x8x1xf32>
      %c0_40 = arith.constant 0 : index
      %c0_41 = arith.constant 0 : index
      %c0_42 = arith.constant 0 : index
      %39 = vector.load %arg13[%c0_40, %c0_41, %c0_42] : memref<2x8x1xf32, #tpu.memory_space<vmem>>, vector<2x8x1xf32>
      tpu.vector_store %arg13[%c0_40, %c0_41, %c0_42], %38 {strides = array<i32>} : memref<2x8x1xf32, #tpu.memory_space<vmem>>, vector<2x8x1xf32>,
      %cst_43 = arith.constant 0.000000e+00 : f32
      %40 = vector.broadcast %cst_43 : f32 to vector<2x8x16xf32>
      %c0_44 = arith.constant 0 : index
      %c0_45 = arith.constant 0 : index
      %c0_46 = arith.constant 0 : index
      %41 = vector.load %arg14[%c0_44, %c0_45, %c0_46] : memref<2x8x16xf32, #tpu.memory_space<vmem>>, vector<2x8x16xf32>
      tpu.vector_store %arg14[%c0_44, %c0_45, %c0_46], %40 {strides = array<i32>} : memref<2x8x16xf32, #tpu.memory_space<vmem>>, vector<2x8x16xf32>,
    } else {
    }
    %c0 = arith.constant 0 : index
    %c0_1 = arith.constant 0 : index
    %c0_2 = arith.constant 0 : index
    %c0_3 = arith.constant 0 : index
    %3 = vector.load %arg4[%c0, %c0_1, %c0_2, %c0_3] : memref<1x2x8x16xbf16, #tpu.memory_space<vmem>>, vector<1x2x8x16xbf16>
    %4 = vector.shape_cast %3 : vector<1x2x8x16xbf16> to vector<2x8x16xbf16>
    %c0_4 = arith.constant 0 : index
    %c0_5 = arith.constant 0 : index
    %c0_6 = arith.constant 0 : index
    %c0_7 = arith.constant 0 : index
    %5 = vector.load %arg5[%c0_4, %c0_5, %c0_6, %c0_7] : memref<1x2x8x16xbf16, #tpu.memory_space<vmem>>, vector<1x2x8x16xbf16>
    %6 = vector.shape_cast %5 : vector<1x2x8x16xbf16> to vector<2x8x16xbf16>
    "tpu.trace_start"() <{level = 10 : i32, message = "hqd,hkd->hqk"}> : () -> ()
    %cst = arith.constant dense<0.000000e+00> : vector<2x8x8xf32>
    %7 = tpu.matmul %4, %6, %cst {dimension_numbers = #tpu.dot_dimension_numbers<[2], [2], [1], [1], [0, 0, 0, 1, 1, 1], [0], [0]>} : vector<2x8x16xbf16>, vector<2x8x16xbf16>, vector<2x8x8xf32> -> vector<2x8x8xf32>
    "tpu.trace_stop"() : () -> ()
    %c0_8 = arith.constant 0 : index
    %c0_9 = arith.constant 0 : index
    %c0_10 = arith.constant 0 : index
    %8 = vector.load %arg12[%c0_8, %c0_9, %c0_10] : memref<2x8x1xf32, #tpu.memory_space<vmem>>, vector<2x8x1xf32>
    %cst_11 = arith.constant dense<0xFF800000> : vector<2x8xf32>
    %9 = vector.multi_reduction <maximumf>, %7, %cst_11 [2] : vector<2x8x8xf32> to vector<2x8xf32>
    %10 = vector.shape_cast %9 : vector<2x8xf32> to vector<2x8x1xf32>
    %11 = arith.maximumf %8, %10 : vector<2x8x1xf32>
    %12 = arith.subf %8, %11 : vector<2x8x1xf32>
    %13 = math.exp %12 : vector<2x8x1xf32>
    %14 = vector.broadcast %11 : vector<2x8x1xf32> to vector<2x8x8xf32>
    %15 = arith.subf %7, %14 : vector<2x8x8xf32>
    %16 = math.exp %15 : vector<2x8x8xf32>
    %c0_12 = arith.constant 0 : index
    %c0_13 = arith.constant 0 : index
    %c0_14 = arith.constant 0 : index
    %17 = vector.load %arg13[%c0_12, %c0_13, %c0_14] : memref<2x8x1xf32, #tpu.memory_space<vmem>>, vector<2x8x1xf32>
    %18 = arith.mulf %13, %17 : vector<2x8x1xf32>
    %cst_15 = arith.constant dense<0.000000e+00> : vector<2x8xf32>
    %19 = vector.multi_reduction <add>, %16, %cst_15 [2] : vector<2x8x8xf32> to vector<2x8xf32>
    %20 = vector.shape_cast %19 : vector<2x8xf32> to vector<2x8x1xf32>
    %21 = arith.addf %18, %20 : vector<2x8x1xf32>
    %c0_16 = arith.constant 0 : index
    %c0_17 = arith.constant 0 : index
    %c0_18 = arith.constant 0 : index
    %22 = vector.load %arg13[%c0_16, %c0_17, %c0_18] : memref<2x8x1xf32, #tpu.memory_space<vmem>>, vector<2x8x1xf32>
    tpu.vector_store %arg13[%c0_16, %c0_17, %c0_18], %21 {strides = array<i32>} : memref<2x8x1xf32, #tpu.memory_space<vmem>>, vector<2x8x1xf32>,
    %c0_19 = arith.constant 0 : index
    %c0_20 = arith.constant 0 : index
    %c0_21 = arith.constant 0 : index
    %23 = vector.load %arg14[%c0_19, %c0_20, %c0_21] : memref<2x8x16xf32, #tpu.memory_space<vmem>>, vector<2x8x16xf32>
    %24 = vector.broadcast %13 : vector<2x8x1xf32> to vector<2x8x16xf32>
    %25 = arith.mulf %24, %23 : vector<2x8x16xf32>
    %26 = arith.truncf %16 : vector<2x8x8xf32> to vector<2x8x8xbf16>
    %c0_22 = arith.constant 0 : index
    %c0_23 = arith.constant 0 : index
    %c0_24 = arith.constant 0 : index
    %c0_25 = arith.constant 0 : index
    %27 = vector.load %arg6[%c0_22, %c0_23, %c0_24, %c0_25] : memref<1x2x8x16xbf16, #tpu.memory_space<vmem>>, vector<1x2x8x16xbf16>
    %28 = vector.shape_cast %27 : vector<1x2x8x16xbf16> to vector<2x8x16xbf16>
    "tpu.trace_start"() <{level = 10 : i32, message = "hqk,hkd->hqd"}> : () -> ()
    %cst_26 = arith.constant dense<0.000000e+00> : vector<2x8x16xf32>
    %29 = tpu.matmul %26, %28, %cst_26 {dimension_numbers = #tpu.dot_dimension_numbers<[2], [1], [1], [2], [0, 0, 0, 1, 1, 2], [0], [0]>} : vector<2x8x8xbf16>, vector<2x8x16xbf16>, vector<2x8x16xf32> -> vector<2x8x16xf32>
    "tpu.trace_stop"() : () -> ()
    %30 = arith.addf %25, %29 : vector<2x8x16xf32>
    %c0_27 = arith.constant 0 : index
    %c0_28 = arith.constant 0 : index
    %c0_29 = arith.constant 0 : index
    %31 = vector.load %arg14[%c0_27, %c0_28, %c0_29] : memref<2x8x16xf32, #tpu.memory_space<vmem>>, vector<2x8x16xf32>
    tpu.vector_store %arg14[%c0_27, %c0_28, %c0_29], %30 {strides = array<i32>} : memref<2x8x16xf32, #tpu.memory_space<vmem>>, vector<2x8x16xf32>,
    %c0_30 = arith.constant 0 : index
    %c0_31 = arith.constant 0 : index
    %c0_32 = arith.constant 0 : index
    %32 = vector.load %arg12[%c0_30, %c0_31, %c0_32] : memref<2x8x1xf32, #tpu.memory_space<vmem>>, vector<2x8x1xf32>
    tpu.vector_store %arg12[%c0_30, %c0_31, %c0_32], %11 {strides = array<i32>} : memref<2x8x1xf32, #tpu.memory_space<vmem>>, vector<2x8x1xf32>,
    %c0_i32_33 = arith.constant 0 : i32
    %33 = arith.cmpi eq, %arg2, %c0_i32_33 : i32
    %34 = arith.extui %33 : i1 to i32
    %c0_i32_34 = arith.constant 0 : i32
    %35 = arith.cmpi ne, %34, %c0_i32_34 : i32
    scf.if %35 {
      %c0_35 = arith.constant 0 : index
      %c0_36 = arith.constant 0 : index
      %c0_37 = arith.constant 0 : index
      %36 = vector.load %arg14[%c0_35, %c0_36, %c0_37] : memref<2x8x16xf32, #tpu.memory_space<vmem>>, vector<2x8x16xf32>
      %c0_38 = arith.constant 0 : index
      %c0_39 = arith.constant 0 : index
      %c0_40 = arith.constant 0 : index
      %37 = vector.load %arg13[%c0_38, %c0_39, %c0_40] : memref<2x8x1xf32, #tpu.memory_space<vmem>>, vector<2x8x1xf32>
      %38 = tpu.reciprocal %37 {approx = true} : vector<2x8x1xf32> -> vector<2x8x1xf32>
      %39 = vector.broadcast %38 : vector<2x8x1xf32> to vector<2x8x16xf32>
      %40 = arith.mulf %36, %39 : vector<2x8x16xf32>
      %41 = arith.truncf %40 : vector<2x8x16xf32> to vector<2x8x16xbf16>
      %c0_41 = arith.constant 0 : index
      %c0_42 = arith.constant 0 : index
      %c0_43 = arith.constant 0 : index
      %42 = vector.load %arg7[%c0_41, %c0_42, %c0_43] : memref<2x16x32xbf16, #tpu.memory_space<vmem>>, vector<2x16x32xbf16>
      "tpu.trace_start"() <{level = 10 : i32, message = "hqd,hdm->hqm"}> : () -> ()
      %cst_44 = arith.constant dense<0.000000e+00> : vector<2x8x32xf32>
      %43 = tpu.matmul %41, %42, %cst_44 {dimension_numbers = #tpu.dot_dimension_numbers<[2], [1], [1], [2], [0, 0, 0, 1, 1, 2], [0], [0]>} : vector<2x8x16xbf16>, vector<2x16x32xbf16>, vector<2x8x32xf32> -> vector<2x8x32xf32>
      "tpu.trace_stop"() : () -> ()
      %cst_45 = arith.constant dense<0.000000e+00> : vector<8x32xf32>
      %44 = vector.multi_reduction <add>, %43, %cst_45 [0] : vector<2x8x32xf32> to vector<8x32xf32>
      %c0_46 = arith.constant 0 : index
      %c0_47 = arith.constant 0 : index
      %45 = vector.load %arg8[%c0_46, %c0_47] : memref<1x32xf32, #tpu.memory_space<vmem>>, vector<1x32xf32>
      %46 = vector.shape_cast %45 : vector<1x32xf32> to vector<32xf32>
      %47 = vector.shape_cast %46 : vector<32xf32> to vector<1x32xf32>
      %48 = vector.broadcast %47 : vector<1x32xf32> to vector<8x32xf32>
      %49 = arith.addf %44, %48 : vector<8x32xf32>
      %c0_48 = arith.constant 0 : index
      %c0_49 = arith.constant 0 : index
      %c0_50 = arith.constant 0 : index
      %50 = vector.load %arg3[%c0_48, %c0_49, %c0_50] : memref<1x8x32xf32, #tpu.memory_space<vmem>>, vector<1x8x32xf32>
      %51 = vector.shape_cast %50 : vector<1x8x32xf32> to vector<8x32xf32>
      %52 = arith.addf %49, %51 : vector<8x32xf32>
      %cst_51 = arith.constant dense<0.000000e+00> : vector<8xf32>
      %53 = vector.multi_reduction <add>, %52, %cst_51 [1] : vector<8x32xf32> to vector<8xf32>
      %54 = vector.shape_cast %53 : vector<8xf32> to vector<8x1xf32>
      %cst_52 = arith.constant 3.200000e+01 : f32
      %55 = vector.broadcast %cst_52 : f32 to vector<8x1xf32>
      %56 = arith.divf %54, %55 : vector<8x1xf32>
      %57 = vector.broadcast %56 : vector<8x1xf32> to vector<8x32xf32>
      %58 = arith.subf %52, %57 : vector<8x32xf32>
      %59 = vector.broadcast %56 : vector<8x1xf32> to vector<8x32xf32>
      %60 = arith.subf %52, %59 : vector<8x32xf32>
      %61 = arith.mulf %58, %60 : vector<8x32xf32>
      %cst_53 = arith.constant dense<0.000000e+00> : vector<8xf32>
      %62 = vector.multi_reduction <add>, %61, %cst_53 [1] : vector<8x32xf32> to vector<8xf32>
      %63 = vector.shape_cast %62 : vector<8xf32> to vector<8x1xf32>
      %cst_54 = arith.constant 3.200000e+01 : f32
      %64 = vector.broadcast %cst_54 : f32 to vector<8x1xf32>
      %65 = arith.divf %63, %64 : vector<8x1xf32>
      %66 = vector.broadcast %56 : vector<8x1xf32> to vector<8x32xf32>
      %67 = arith.subf %52, %66 : vector<8x32xf32>
      %cst_55 = arith.constant 9.99999974E-6 : f32
      %68 = vector.broadcast %cst_55 : f32 to vector<8x1xf32>
      %69 = arith.addf %65, %68 : vector<8x1xf32>
      %70 = math.rsqrt %69 : vector<8x1xf32>
      %71 = vector.broadcast %70 : vector<8x1xf32> to vector<8x32xf32>
      %72 = arith.mulf %67, %71 : vector<8x32xf32>
      %c0_56 = arith.constant 0 : index
      %c0_57 = arith.constant 0 : index
      %73 = vector.load %arg9[%c0_56, %c0_57] : memref<1x32xf32, #tpu.memory_space<vmem>>, vector<1x32xf32>
      %74 = vector.shape_cast %73 : vector<1x32xf32> to vector<32xf32>
      %75 = vector.shape_cast %74 : vector<32xf32> to vector<1x32xf32>
      %76 = vector.broadcast %75 : vector<1x32xf32> to vector<8x32xf32>
      %77 = arith.mulf %72, %76 : vector<8x32xf32>
      %c0_58 = arith.constant 0 : index
      %c0_59 = arith.constant 0 : index
      %78 = vector.load %arg10[%c0_58, %c0_59] : memref<1x32xf32, #tpu.memory_space<vmem>>, vector<1x32xf32>
      %79 = vector.shape_cast %78 : vector<1x32xf32> to vector<32xf32>
      %80 = vector.shape_cast %79 : vector<32xf32> to vector<1x32xf32>
      %81 = vector.broadcast %80 : vector<1x32xf32> to vector<8x32xf32>
      %82 = arith.addf %77, %81 : vector<8x32xf32>
      %c0_60 = arith.constant 0 : index
      %c0_61 = arith.constant 0 : index
      %c0_62 = arith.constant 0 : index
      %83 = vector.load %arg11[%c0_60, %c0_61, %c0_62] : memref<1x8x32xf32, #tpu.memory_space<vmem>>, vector<1x8x32xf32>
      %84 = vector.shape_cast %83 : vector<1x8x32xf32> to vector<8x32xf32>
      %85 = vector.shape_cast %82 : vector<8x32xf32> to vector<1x8x32xf32>
      tpu.vector_store %arg11[%c0_60, %c0_61, %c0_62], %85 {strides = array<i32>} : memref<1x8x32xf32, #tpu.memory_space<vmem>>, vector<1x8x32xf32>,
    } else {
    }
    return
  }
  func.func @transform_0(%arg0: i32, %arg1: i32, %arg2: i32) -> (i32, i32, i32) {
    %c0_i32 = arith.constant 0 : i32
    %c0_i32_0 = arith.constant 0 : i32
    return %arg0, %arg1, %c0_i32 : i32, i32, i32
  }
  func.func @transform_1(%arg0: i32, %arg1: i32, %arg2: i32) -> (i32, i32, i32, i32) {
    %c0_i32 = arith.constant 0 : i32
    %c0_i32_0 = arith.constant 0 : i32
    %c0_i32_1 = arith.constant 0 : i32
    return %arg0, %c0_i32, %arg1, %c0_i32_0 : i32, i32, i32, i32
  }
  func.func @transform_2(%arg0: i32, %arg1: i32, %arg2: i32) -> (i32, i32, i32, i32) {
    %c0_i32 = arith.constant 0 : i32
    %c0_i32_0 = arith.constant 0 : i32
    %c0_i32_1 = arith.constant 0 : i32
    return %arg0, %c0_i32, %arg2, %c0_i32_0 : i32, i32, i32, i32
  }
  func.func @transform_3(%arg0: i32, %arg1: i32, %arg2: i32) -> (i32, i32, i32, i32) {
    %c0_i32 = arith.constant 0 : i32
    %c0_i32_0 = arith.constant 0 : i32
    %c0_i32_1 = arith.constant 0 : i32
    return %arg0, %c0_i32, %arg2, %c0_i32_0 : i32, i32, i32, i32
  }
  func.func @transform_4(%arg0: i32, %arg1: i32, %arg2: i32) -> (i32, i32, i32) {
    %c0_i32 = arith.constant 0 : i32
    %c0_i32_0 = arith.constant 0 : i32
    %c0_i32_1 = arith.constant 0 : i32
    %c0_i32_2 = arith.constant 0 : i32
    return %c0_i32, %c0_i32_0, %c0_i32_1 : i32, i32, i32
  }
  func.func @transform_5(%arg0: i32, %arg1: i32, %arg2: i32) -> (i32, i32) {
    %c0_i32 = arith.constant 0 : i32
    %c0_i32_0 = arith.constant 0 : i32
    %c0_i32_1 = arith.constant 0 : i32
    return %c0_i32, %c0_i32_0 : i32, i32
  }
  func.func @transform_6(%arg0: i32, %arg1: i32, %arg2: i32) -> (i32, i32) {
    %c0_i32 = arith.constant 0 : i32
    %c0_i32_0 = arith.constant 0 : i32
    %c0_i32_1 = arith.constant 0 : i32
    return %c0_i32, %c0_i32_0 : i32, i32
  }
  func.func @transform_7(%arg0: i32, %arg1: i32, %arg2: i32) -> (i32, i32) {
    %c0_i32 = arith.constant 0 : i32
    %c0_i32_0 = arith.constant 0 : i32
    %c0_i32_1 = arith.constant 0 : i32
    return %c0_i32, %c0_i32_0 : i32, i32
  }
  func.func @transform_8(%arg0: i32, %arg1: i32, %arg2: i32) -> (i32, i32, i32) {
    %c0_i32 = arith.constant 0 : i32
    %c0_i32_0 = arith.constant 0 : i32
    return %arg0, %arg1, %c0_i32 : i32, i32, i32
  }
}

</mosaic_0001>

<bundles_post_ra>
// kernel: tpu_custom_call.1
= control target key start
LH: loop header
LB: loop body
LE: loop exit
PB: predicated region body
PF: predicated region fallthrough
CT: control target
= control target key end

     0   :  { %s1926_s0 = inlined_call_operand.hbm [shape: f32[2,8,32], index: 0, kind: input, shape index: {}]   ;;  %s1927_s1 = inlined_call_operand.hbm [shape: bf16[2,2,8,16], index: 1, kind: input, shape index: {}]   ;;  %s1928_s2 = inlined_call_operand.hbm [shape: bf16[2,2,8,16], index: 2, kind: input, shape index: {}]   ;;  %s1929_s3 = inlined_call_operand.hbm [shape: bf16[2,2,8,16], index: 3, kind: input, shape index: {}]   ;;  %s1930_s4 = inlined_call_operand.hbm [shape: bf16[2,16,32], index: 4, kind: input, shape index: {}]   ;;  %s1931_s5 = inlined_call_operand.vmem [shape: f32[1,32], index: 5, kind: input, shape index: {}]   ;;  %s1932_s6 = inlined_call_operand.vmem [shape: f32[1,32], index: 6, kind: input, shape index: {}]   ;;  %s1933_s7 = inlined_call_operand.vmem [shape: f32[1,32], index: 7, kind: input, shape index: {}]   ;;  %s1934_s8 = inlined_call_operand.hbm [shape: f32[2,8,32], index: 8, kind: output, shape index: {}]  }
   0x1   :  { %1947 = sst [smem:[#allocation25_spill]] %s1927_s1 }
   0x2   :  { %1948 = sst [smem:[#allocation26_spill]] %s1930_s4 }
   0x3   :  { %1949 = sst [smem:[#allocation27_spill]] %s1932_s6 }
   0x4   :  { %1950 = sst [smem:[#allocation28_spill]] %s1933_s7 }
   0x5   :  { %1951 = sst [smem:[#allocation29_spill]] %s1934_s8 }
   0x6   :  { %13 = vsyncpa [#allocation6], 0 }
   0x7   :  { %15 = vsyncpa [#allocation6 + $0x1], 0 }
   0x8   :  { %16 = vsyncpa [#allocation9], 0 }
   0x9   :  { %18 = vsyncpa [#allocation9 + $0x1], 0 }
   0xa   :  { %19 = vsyncpa [#allocation12], 0 }
   0xb   :  { %21 = vsyncpa [#allocation12 + $0x1], 0 }
   0xc   :  { %22 = vsyncpa [#allocation7], 0 }
   0xd   :  { %24 = vsyncpa [#allocation7 + $0x1], 0  ;;  %s1599_s27 = smov 0   ;;  %s1601_s28 = smov 0  }
   0xe   :  { %s1603_s29 = smov 0   ;;  %s1605_s30 = smov 0  }
   0xf   :  { %s1607_s9 = smov 0   ;;  %s1609_s10 = smov 0  }
  0x10 LB: > { %1952 = sst [smem:[#allocation20_spill]] %s1520_s27  ;;  %s1630_s11 = sadd.s32 4294967295, %s1540_s10   ;;  %s1540_s10 = sphi %s1609_s10, %s30_s10   ;;  %s1536_s9 = sphi %s1607_s9, %s1983_s9   ;;  %s1532_s30 = sphi %s1605_s30, %s1982_s30   ;;  %s1528_s29 = sphi %s1603_s29, %s1986_s29   ;;  %s1524_s28 = sphi %s1601_s28, %s1985_s28   ;;  %s1520_s27 = sphi %s1599_s27, %s1984_s27  }
  0x11   : > { %1953 = sst [smem:[#allocation21_spill]] %s1536_s9  ;;  %s1110_s12 = sadd.s32 4294967294, %s1540_s10  }
  0x12   : > { %p65_p0 = scmp.ne.s32.totalorder %s1528_s29, %s1524_s28  ;;  %p66_p1 = scmp.eq.s32.totalorder %s1540_s10, 0 }
  0x13   : > { %p71_p2 = scmp.ne.s32.totalorder %s1524_s28, %s1520_s27  ;;  %p72_p3 = scmp.eq.s32.totalorder %s1630_s11, 0 }
  0x14   : > { %p265_p4 = scmp.eq.s32.totalorder %s1630_s11, 1  ;;  %p1641_p5 = por %p66_p1, %p65_p0 }
  0x15   : > { %p271_p6 = scmp.eq.s32.totalorder %s1110_s12, 1  ;;  %p1647_p7 = por %p72_p3, %p71_p2 }
  0x16   : > { %p1651_p8 = por %p265_p4, %p65_p0  ;;  %p1111_p10 = scmp.ge.s32.totalorder %s1540_s10, 1 }
  0x17   : > { %p1655_p9 = por %p271_p6, %p71_p2  ;;  %p278_p11 = scmp.lt.s32.totalorder %s1540_s10, 3 }
  0x18   : > { %s1956_s16 = scalar_select %p1651_p8, 1, 0 }
  0x19   : > { %s1957_s17 = scalar_select %p1655_p9, 1, 0 }
  0x1a   : > { %p1661_p12 = pnand %p1111_p10, %p278_p11  ;;  %s1542_s19 = smov [#allocation13]  }
  0x1b   : > { %1958 = sst [smem:[#allocation22_spill]] %s1957_s17  ;;  %s290_s20 = sshll.u32 %s1542_s19, 4  ;;  %s291_s20 = int_to_ptr.vmem [resolvable:$true] %s290_s20 }
  0x1c   : > { %p1212_p13 = pneg %p1661_p12  ;;  %s49_s22 = sadd.s32 1, %s1536_s9 }
  0x1d   : > { %s1938_s23 = sand.u32 1, %s1528_s29   ;;  %p1677_p2 = scmp.ge.s32.totalorder %s49_s22, 2 }
  0x1e   : > { %p1671_p4 = pnand %p1212_p13, %p72_p3  ;;  %s1321_s25 = scalar_lea.vmem %s291_s20, 256 }
  0x1f   : > { %p1322_p10 = scmp.ne.s32.totalorder %s291_s20, %s1321_s25  ;;  %p1329_p0 = scmp.lt.s32.totalorder %s291_s20, %s291_s20 }
  0x20   : > { %p1312_p6 = pneg %p1671_p4  ;;  %p1330_p1 = scmp.lt.s32.totalorder %s1321_s25, %s1321_s25 }
  0x22   : > { %p1324_p11 = pnand %p1322_p10, %p1312_p6  ;;  %p1331_p8 = por %p1330_p1, %p1329_p0 }
  0x24   : > { %p1325_p9 = pneg %p1324_p11 }
  0x26   : > { %p1332_p13 = pnand %p1331_p8, %p1325_p9 }
  0x28   : > { %1335 = shalt.err (!%p1332_p13)
}
  0x29   : > { %s1939_s26 = smov 64   ;;  %s1941_s12 = smov 4  }
  0x2a   : > { %s1962_s4 = sld [smem:[#allocation26_spill]]  ;;  %s1988_s22 = smov (%p1677_p2, %s49_s22), 0 }
  0x2b   : > { %1963 = sst [smem:[#allocation23_spill]] %s1988_s22  ;;  %s1697_s13 = sshll.u32 %s1938_s23, 3 }
  0x2c   : > { %s1700_s17 = sshll.u32 %s1536_s9, 7  ;;  %s53_s27 = ssub.s32 %s1536_s9, %s1988_s22 }
  0x2d   : > { %p1964_p8 = scmp.lt.s32.totalorder %s1540_s10, 2  ;;  %p56_p0 = scmp.eq.s32.totalorder %s53_s27, 0 }
  0x2e   : > { %s1966_s24 = sadd.s32 1, %s1528_s29  ;;  %s1968_s1 = sld [smem:[#allocation25_spill]] }
  0x2f   : > { %p1708_p9 = pnand %p1964_p8, %p1641_p5  ;;  %s1545_s27 = smov [#allocation8]  }
  0x30   : > { %1215 = dma.hbm_to_vmem [thread:$0]  (!%p1671_p4), %s1962_s4, 256, %s291_s20, [#allocation12], %s1939_s26, %s1939_s26, %s1941_s12  }
  0x31   : > { %s1945_s20 = sand.u32 1, %s1540_s10   ;;  %s336_s12 = scalar_lea.vmem [#allocation8], %s1697_s13 }
  0x32   : > { %s1716_s19 = scalar_select %p56_p0, %s1528_s29, %s1966_s24  }
  0x33   : > { %s344_s4 = sshll.u32 %s336_s12, 4  ;;  %s1725_s14 = scalar_lea.sflag [#allocation9], %s1945_s20  ;;  %s345_s4 = int_to_ptr.vmem [resolvable:$true] %s344_s4 }
  0x34   : > { %1967 = sst [smem:[#allocation24_spill]] %s1716_s19  ;;  %s343_s26 = scalar_lea.hbm %s1968_s1, %s1700_s17 }
  0x35   : > { %p1338_p5 = pneg %p1708_p9  ;;  %s1349_s22 = scalar_lea.vmem %s345_s4, 128 }
  0x36   : > { %p1350_p1 = scmp.ne.s32.totalorder %s345_s4, %s1349_s22  ;;  %s1354_s24 = sshll.u32 %s1545_s27, 4  ;;  %s1355_s24 = int_to_ptr.vmem [resolvable:$false] %s1354_s24 }
  0x37   : > { %s1356_s9 = scalar_lea.vmem %s1355_s24, 256  ;;  %p1357_p6 = scmp.lt.s32.totalorder %s345_s4, %s1355_s24 }
  0x38   : > { %p1352_p4 = pnand %p1350_p1, %p1338_p5  ;;  %p1358_p10 = scmp.lt.s32.totalorder %s1356_s9, %s1349_s22 }
  0x3a   : > { %p1353_p2 = pneg %p1352_p4  ;;  %p1359_p11 = por %p1358_p10, %p1357_p6 }
  0x3c   : > { %p1360_p13 = pnand %p1359_p11, %p1353_p2 }
  0x3e   : > { %1363 = shalt.err (!%p1360_p13)
}
  0x3f   : > { %s1969_s23 = smov 4   ;;  %s1970_s12 = smov 64  }
  0x40   : > { %1222 = dma.hbm_to_vmem [thread:$0]  (!%p1708_p9), %s343_s26, 128, %s345_s4, %s1725_s14, %s1970_s12, %s1970_s12, %s1969_s23  }
  0x41   : > { %s323_s24 = scalar_lea.hbm %s1926_s0, %s1700_s17  ;;  %s317_s9 = scalar_lea.vmem [#allocation5], %s1697_s13 }
  0x42   : > { %s325_s22 = sshll.u32 %s317_s9, 4  ;;  %s365_s19 = scalar_lea.hbm %s1928_s2, %s1700_s17  ;;  %s326_s22 = int_to_ptr.vmem [resolvable:$true] %s325_s22 }
  0x43   : > { %s1971_s8 = sand.u32 1, %s1528_s29   ;;  %s1377_s6 = scalar_lea.vmem %s326_s22, 128 }
  0x44   : > { %s314_s7 = scalar_lea.sflag [#allocation6], %s1971_s8  ;;  %p1378_p8 = scmp.ne.s32.totalorder %s326_s22, %s1377_s6 }
  0x45   : > { %s1546_s4 = smov [#allocation5]  }
  0x46   : > { %p1380_p0 = pnand %p1378_p8, %p1338_p5  ;;  %s1382_s26 = sshll.u32 %s1546_s4, 4  ;;  %s1383_s26 = int_to_ptr.vmem [resolvable:$false] %s1382_s26 }
  0x47   : > { %s1384_s25 = scalar_lea.vmem %s1383_s26, 256  ;;  %p1385_p4 = scmp.lt.s32.totalorder %s326_s22, %s1383_s26 }
  0x48   : > { %p1381_p1 = pneg %p1380_p0  ;;  %p1386_p2 = scmp.lt.s32.totalorder %s1384_s25, %s1377_s6 }
  0x4a   : > { %p1387_p6 = por %p1386_p2, %p1385_p4 }
  0x4c   : > { %p1388_p10 = pnand %p1387_p6, %p1381_p1 }
  0x4e   : > { %1391 = shalt.err (!%p1388_p10)
}
  0x4f   : > { %1219 = dma.hbm_to_vmem [thread:$0]  (!%p1708_p9), %s323_s24, 128, %s326_s22, %s314_s7  }
  0x50   : > { %s358_s1 = scalar_lea.vmem [#allocation10], %s1697_s13  ;;  %s387_s9 = scalar_lea.hbm %s1929_s3, %s1700_s17 }
  0x51   : > { %s366_s8 = sshll.u32 %s358_s1, 4  ;;  %s1547_s6 = smov [#allocation10]   ;;  %s367_s8 = int_to_ptr.vmem [resolvable:$true] %s366_s8 }
  0x52   : > { %s1405_s4 = scalar_lea.vmem %s367_s8, 128  ;;  %s1410_s26 = sshll.u32 %s1547_s6, 4  ;;  %s1411_s26 = int_to_ptr.vmem [resolvable:$false] %s1410_s26 }
  0x53   : > { %p1406_p11 = scmp.ne.s32.totalorder %s367_s8, %s1405_s4  ;;  %s1412_s25 = scalar_lea.vmem %s1411_s26, 256 }
  0x54   : > { %p1413_p0 = scmp.lt.s32.totalorder %s367_s8, %s1411_s26  ;;  %p1414_p1 = scmp.lt.s32.totalorder %s1412_s25, %s1405_s4 }
  0x55   : > { %p1408_p13 = pnand %p1406_p11, %p1338_p5 }
  0x56   : > { %p1415_p4 = por %p1414_p1, %p1413_p0 }
  0x57   : > { %p1409_p8 = pneg %p1408_p13 }
  0x59   : > { %p1416_p2 = pnand %p1415_p4, %p1409_p8 }
  0x5b   : > { %1419 = shalt.err (!%p1416_p2)
}
  0x5c   : > { %1225 = dma.hbm_to_vmem [thread:$0]  (!%p1708_p9), %s365_s19, 128, %s367_s8, %s1725_s14, %s1970_s12, %s1970_s12, %s1969_s23  }
  0x5d   : > { %s380_s22 = scalar_lea.vmem [#allocation11], %s1697_s13  ;;  %s1972_s20 = sand.u32 1, %s1540_s10  }
  0x5e   : > { %s388_s1 = sshll.u32 %s380_s22, 4  ;;  %s377_s27 = scalar_lea.sflag [#allocation12], %s1972_s20  ;;  %s389_s1 = int_to_ptr.vmem [resolvable:$true] %s388_s1 }
  0x5f   : > { %s1433_s4 = scalar_lea.vmem %s389_s1, 128  ;;  %s1548_s6 = smov [#allocation11]  }
  0x60   : > { %p1434_p6 = scmp.ne.s32.totalorder %s389_s1, %s1433_s4  ;;  %s1438_s26 = sshll.u32 %s1548_s6, 4  ;;  %s1439_s26 = int_to_ptr.vmem [resolvable:$false] %s1438_s26 }
  0x61   : > { %s1440_s25 = scalar_lea.vmem %s1439_s26, 256  ;;  %p1441_p13 = scmp.lt.s32.totalorder %s389_s1, %s1439_s26 }
  0x62   : > { %p1436_p10 = pnand %p1434_p6, %p1338_p5  ;;  %p1442_p8 = scmp.lt.s32.totalorder %s1440_s25, %s1433_s4 }
  0x64   : > { %p1437_p11 = pneg %p1436_p10  ;;  %p1443_p0 = por %p1442_p8, %p1441_p13 }
  0x66   : > { %p1444_p1 = pnand %p1443_p0, %p1437_p11 }
  0x68   : > { %1447 = shalt.err (!%p1444_p1)
}
  0x69   : > { %1228 = dma.hbm_to_vmem [thread:$0]  (!%p1708_p9), %s387_s9, 128, %s389_s1, %s377_s27, %s1970_s12, %s1970_s12, %s1969_s23  }
  0x6a   : > { %400 = sbr.rel (%p1661_p12) target bundleno = 1422 (0x58e), region = 52  ;;  %s1792_s14 = sand.u32 (!%p1661_p12), 1, %s1524_s28  }
  0x6b   : > { %s1795_s8 = sshll.u32 (!%p1661_p12), %s1792_s14, 3  ;;  %s403_s21 = scalar_lea.sflag (!%p1661_p12), [#allocation6], %s1792_s14 }
  0x6c   : > { %s406_s7 = scalar_lea.vmem (!%p1661_p12), [#allocation5], %s1795_s8 }
  0x6f   : > { %1499 = dma.done.wait (%p1647_p7), %s403_s21, 128  }
  0x70   : > { %1501 = vsyncadd (%p1647_p7), %s403_s21, 4294967168  ;;  %s411_s17 = sand.u32 1, %s1630_s11   ;;  %s415_s23 = scalar_lea.vmem [#allocation8], %s1795_s8 }
  0x71   : > { %s412_s18 = scalar_lea.sflag [#allocation9], %s411_s17 }
  0x72   : > { %1503 = dma.done.wait (%p1647_p7), %s412_s18, 256  }
  0x73   : > { %1505 = vsyncadd (%p1647_p7), %s412_s18, 4294967040  ;;  %s424_s12 = scalar_lea.vmem [#allocation10], %s1795_s8  ;;  %s430_s9 = scalar_lea.sflag [#allocation12], %s411_s17 }
  0x74   : > { %s433_s24 = scalar_lea.vmem [#allocation11], %s1795_s8 }
  0x75   : > { %1507 = dma.done.wait (%p1647_p7), %s430_s9, 128  }
  0x76   : > { %1509 = vsyncadd (%p1647_p7), %s430_s9, 4294967168 }
  0x77   : > { %1511 = dma.done.wait (%p72_p3), [#allocation12], 256  }
  0x78   : > { %1513 = vsyncadd (%p72_p3), [#allocation12], 4294967040  ;;  %vm495_vm0 = vcmask 130048   ;;  %v1549_v0 = vmov 0.0   ;;  %vm1550_vm1 = vmmov 0   ;;  %vm490_vm2 = vcmask 7168  }
  0x79   : > { %1162 = vmatprep.subr.bf16.mxu0 %v1549_v0  ;;  %1168 = vmatprep.subr.bf16.mxu1 %v1549_v0  ;;  %496 = vst.msk [vmem:[#allocation4] sm:$0xff] %vm495_vm0, %v1549_v0  ;;  %497 = vst.msk [vmem:[#allocation4 + $0x8] sm:$0xff] %vm495_vm0, %v1549_v0  ;;  %v500_v1 = vld [vmem:[%s424_s12] sm:$0xf]  ;;  %v501_v2 = vld [vmem:[%s424_s12 + $0x4] sm:$0xf] }
  0x7a   : > { %1164 = vmatprep.mubr.msk.bf16.mxu0 %vm1550_vm1, %v1549_v0  ;;  %1170 = vmatprep.mubr.msk.bf16.mxu1 %vm1550_vm1, %v1549_v0  ;;  %v507_v3 = vsel %vm495_vm0, %v500_v1, 0  ;;  %v553_v4 = vsel %vm495_vm0, %v501_v2, 0  ;;  %v498_v5 = vld [vmem:[%s415_s23] sm:$0xf]  ;;  %v499_v6 = vld [vmem:[%s415_s23 + $0x4] sm:$0xf] }
  0x7b   : > { %1163 = vmatpush3.bf16.xpose.msra.mxu0 %v507_v3  ;;  %1169 = vmatpush3.bf16.xpose.msra.mxu1 %v553_v4  ;;  %v1551_v7 = vmov -1e+30   ;;  %493 = vst.msk [vmem:[#allocation3] sm:$0xff] %vm490_vm2, %v1549_v0  ;;  %494 = vst.msk [vmem:[#allocation3 + $0x8] sm:$0xff] %vm490_vm2, %v1549_v0  ;;  %vm597_vm3 = vcmask 64512   ;;  %v1552_v18 = vmov 0  }
  0x7c   : > { %1174 = vmatprep.subr.bf16.mxu0 %v1549_v0  ;;  %1180 = vmatprep.subr.bf16.mxu1 %v1549_v0  ;;  %491 = vst.msk [vmem:[#allocation2] sm:$0xff] %vm490_vm2, %v1551_v7  ;;  %492 = vst.msk [vmem:[#allocation2 + $0x8] sm:$0xff] %vm490_vm2, %v1551_v7  ;;  %v659_v27 = vld [vmem:[%s433_s24] sm:$0xf]  ;;  %vm664_vm4 = vcmask 1043456   ;;  %v1294_v57 = vld [vmem:[#allocation13] sm:$0xff]  }
  0x7d   : > { %1292 = vset.pattern.permute.xlu1 %v1552_v18  ;;  %1293 = vset.pattern.permute.xlu0 %v1552_v18  ;;  %v666_v28 = vsel %vm664_vm4, %v659_v27, 0  ;;  %v660_v29 = vld [vmem:[%s433_s24 + $0x4] sm:$0xf]  ;;  %v1295_v58 = vld [vmem:[#allocation13 + $0x8] sm:$0xff]   ;;  %vm885_vm5 = vcmask 261120   ;;  %s1973_s20 = sld [smem:[#allocation27_spill]] }
  0x7e   : > { %v712_v30 = vsel %vm664_vm4, %v660_v29, 0  ;;  %v1140_v27 = vld [vmem:[%s1931_s5] ss:$0 sm:$0xff]  ;;  %s1974_s6 = sld [smem:[#allocation28_spill]]  ;;  %s1144_s26 = sshll.u32 %s1532_s30, 7 }
  0x7f   : > { %s484_s25 = scalar_lea.vmem [#allocation14], %s1795_s8  ;;  %s931_s18 = scalar_lea.sflag [#allocation7], %s1792_s14 }
  0x80   : > { %v643_v61 = vld [vmem:[#allocation4] sm:$0xff]  ;;  %s945_s13 = sshll.u32 %s484_s25, 4  ;;  %p1976_p7 = scmp.ne.s32.totalorder %s1956_s16, 0  ;;  %s946_s13 = int_to_ptr.vmem [resolvable:$true] %s945_s13 }
  0x81   : > { %s1448_s23 = scalar_lea.vmem %s946_s13, 128  ;;  %s1553_s12 = smov [#allocation14]  }
  0x82   : > { %1165 = vmatmul.mubr.msk.bf16.vlgmr.msra.gmra.mxu0 %vm495_vm0, %v498_v5  ;;  %1171 = vmatmul.mubr.msk.bf16.vlgmr.msra.gmra.mxu1 %vm495_vm0, %v499_v6  ;;  %v628_v47 = vld [vmem:[#allocation3] sm:$0xff]  ;;  %v629_v50 = vld [vmem:[#allocation3 + $0x8] sm:$0xff]  ;;  %p1449_p3 = scmp.ne.s32.totalorder %s946_s13, %s1448_s23  ;;  %s1452_s9 = sshll.u32 %s1553_s12, 4  ;;  %s1453_s9 = int_to_ptr.vmem [resolvable:$false] %s1452_s9 }
  0x83   : > { %1176 = vmatprep.mubr.msk.bf16.mxu0 %vm1550_vm1, %v1549_v0  ;;  %1182 = vmatprep.mubr.msk.bf16.mxu1 %vm1550_vm1, %v1549_v0  ;;  %v595_v19 = vld [vmem:[#allocation2] sm:$0xff]  ;;  %v596_v22 = vld [vmem:[#allocation2 + $0x8] sm:$0xff]  ;;  %s1454_s30 = scalar_lea.vmem %s1453_s9, 256  ;;  %p1455_p5 = scmp.lt.s32.totalorder %s946_s13, %s1453_s9 }
  0x84   : > { %1175 = vmatpush3.bf16.msra.mxu0 %v666_v28  ;;  %1181 = vmatpush3.bf16.msra.mxu1 %v712_v30  ;;  %p1450_p12 = pnand %p1449_p3, %p1976_p7  ;;  %p1456_p4 = scmp.lt.s32.totalorder %s1454_s30, %s1448_s23 }
  0x85   : > { %1186 = vmatprep.subr.bf16.mxu0 %v1549_v0  ;;  %1192 = vmatprep.subr.bf16.mxu1 %v1549_v0 }
  0x86   : > { %p1451_p9 = pneg %p1450_p12  ;;  %p1457_p2 = por %p1456_p4, %p1455_p5 }
  0x88   : > { %p1458_p6 = pnand %p1457_p2, %p1451_p9 }
 0x142   : > { %v543_v8 = vpop.f32.mrf.mxu0  ;;  %v589_v9 = vpop.f32.mrf.mxu1 }
 0x143   : > { %v598_v10 = vsel %vm597_vm3, %v543_v8, -inf  ;;  %v601_v13 = vsel %vm597_vm3, %v589_v9, -inf }
 0x144   : > { %v1172_v11 = vpop.f32.mrf.mxu1  ;;  %599 = vmax.xlane.f32.xlu0 %v598_v10  ;;  %v1166_v12 = vpop.f32.mrf.mxu0 }
 0x146   : > { %v546_v14 = vpop.f32.mrf.mxu0  ;;  %v592_v15 = vpop.f32.mrf.mxu1 }
 0x148   : > { %v1173_v16 = vpop.f32.mrf.mxu1  ;;  %602 = vmax.xlane.f32.xlu0 %v601_v13  ;;  %v1167_v17 = vpop.f32.mrf.mxu0 }
 0x1cd   : > { %v600_v20 = vpop.xlane.xlu0 %599 }
 0x1ce   : > { %v604_v21 = vmax.f32 %v595_v19, %v600_v20 }
 0x1d0   : > { %v606_v23 = vsub.f32 %v595_v19, %v604_v21  ;;  %758 = vst.msk [vmem:[#allocation2] sm:$0xff] %vm490_vm2, %v604_v21  ;;  %614 = vperm.xlu1 %1292, %v604_v21  }
 0x1d1   : > { %v603_v24 = vpop.xlane.xlu0 %602 }
 0x1d2   : > { %v605_v25 = vmax.f32 %v596_v22, %v603_v24  ;;  %v608_v44 = vmul.f32 1.442695, %v606_v23 }
 0x1d4   : > { %v607_v26 = vsub.f32 %v596_v22, %v605_v25  ;;  %759 = vst.msk [vmem:[#allocation2 + $0x8] sm:$0xff] %vm490_vm2, %v605_v25  ;;  %619 = vperm.xlu1 %1292, %v605_v25  }
 0x1d6   : > { %v610_v41 = vmul.f32 1.442695, %v607_v26 }
 0x24b   : > { %v615_v31 = vpop.permute.xlu1 %614 }
 0x24c   : > { %v622_v32 = vsub.f32 %v543_v8, %v615_v31  ;;  %v897_v31 = vld [vmem:[%s406_s7] sm:$0xff]  ;;  %s1975_s7 = sld [smem:[#allocation29_spill]] }
 0x24e   : > { %v624_v33 = vmul.f32 1.442695, %v622_v32 }
 0x24f   : > { %v620_v34 = vpop.permute.xlu1 %619 }
 0x250   : > { %1296 = vpow2.f32 %v624_v33  ;;  %v623_v35 = vsub.f32 %v589_v9, %v620_v34 }
 0x252   : > { %v626_v36 = vmul.f32 1.442695, %v623_v35  ;;  %s943_s17 = scalar_lea.hbm %s1975_s7, %s1144_s26 }
 0x254   : > { %1298 = vpow2.f32 %v626_v36 }
 0x255   : > { %1300 = vpow2.f32 %v610_v41 }
 0x256   : > { %1302 = vpow2.f32 %v608_v44 }
 0x25d   : > { %v1297_v37 = vpop.eup %1296 }
 0x25e   : > { %v632_v38 = vsel %vm597_vm3, %v1297_v37, 0.0  ;;  %v657_v39 = vpack.c.bf16 %v1297_v37, %v1297_v37 }
 0x25f   : > { %633 = vadd.xlane.f32.xlu0 %v632_v38 }
 0x260   : > { %1177 = vmatmul.mubr.msk.bf16.vlgmr.msra.gmra.mxu0 %vm597_vm3, %v657_v39 }
 0x261   : > { %v1299_v40 = vpop.eup %1298  ;;  %1188 = vmatprep.mubr.msk.bf16.mxu0 %vm1550_vm1, %v1549_v0  ;;  %1187 = vmatpush3.bf16.msra.mxu0 %v1294_v57 }
 0x262   : > { %v635_v42 = vsel %vm597_vm3, %v1299_v40, 0.0  ;;  %v658_v43 = vpack.c.bf16 %v1299_v40, %v1299_v40  ;;  %v1301_v45 = vpop.eup %1300 }
 0x263   : > { %636 = vadd.xlane.f32.xlu1 %v635_v42  ;;  %v1303_v46 = vpop.eup %1302  ;;  %v631_v52 = vmul.f32 %v1301_v45, %v629_v50 }
 0x264   : > { %1183 = vmatmul.mubr.msk.bf16.vlgmr.msra.gmra.mxu1 %vm597_vm3, %v658_v43  ;;  %v630_v48 = vmul.f32 %v1303_v46, %v628_v47 }
 0x265   : > { %1194 = vmatprep.mubr.msk.bf16.mxu1 %vm1550_vm1, %v1549_v0  ;;  %1193 = vmatpush3.bf16.msra.mxu1 %v1295_v58  ;;  %v644_v0 = vld [vmem:[#allocation4 + $0x8] sm:$0xff] }
 0x274   : > { %652 = vperm.xlu1 %1292, %v1301_v45  }
 0x275   : > { %647 = vperm.xlu0 %1293, %v1303_v46   ;;  %v1141_v46 = vld [vmem:[%s1973_s20] ss:$0 sm:$0xff] }
 0x2e8   : > { %v634_v49 = vpop.xlane.xlu0 %633 }
 0x2e9   : > { %v638_v51 = vadd.f32 %v634_v49, %v630_v48  ;;  %v1142_v48 = vld [vmem:[%s1974_s6] ss:$0 sm:$0xff] }
 0x2eb   : > { %641 = vst.msk [vmem:[#allocation3] sm:$0xff] %vm490_vm2, %v638_v51 }
 0x2ec   : > { %v637_v53 = vpop.xlane.xlu1 %636 }
 0x2ed   : > { %v639_v54 = vadd.f32 %v637_v53, %v631_v52 }
 0x2ef   : > { %642 = vst.msk [vmem:[#allocation3 + $0x8] sm:$0xff] %vm490_vm2, %v639_v54 }
 0x2f0   : > { %v648_v62 = vpop.permute.xlu0 %647  ;;  %v653_v1 = vpop.permute.xlu1 %652 }
 0x2f1   : > { %v655_v63 = vmul.f32 %v648_v62, %v643_v61  ;;  %v656_v5 = vmul.f32 %v653_v1, %v644_v0 }
 0x2f2   : > { %v765_v55 = vld [vmem:[#allocation3] sm:$0xff] }
 0x2f3   : > { %1304 = vrcp.f32 %v765_v55 }
 0x2f6   : > { %v766_v56 = vld [vmem:[#allocation3 + $0x8] sm:$0xff] }
 0x2f7   : > { %1306 = vrcp.f32 %v766_v56 }
 0x300   : > { %v1305_v59 = vpop.eup %1304 }
 0x301   : > { %771 = vperm.xlu0 %1293, %v1305_v59  }
 0x304   : > { %v1307_v60 = vpop.eup %1306 }
 0x305   : > { %776 = vperm.xlu0 %1293, %v1307_v60  }
 0x320   : > { %v702_v2 = vpop.f32.mrf.mxu0 }
 0x321   : > { %v754_v3 = vadd.f32 %v702_v2, %v655_v63 }
 0x322   : > { %v1178_v4 = vpop.f32.mrf.mxu0 }
 0x323   : > { %756 = vst.msk [vmem:[#allocation4] sm:$0xff] %vm495_vm0, %v754_v3 }
 0x324   : > { %v705_v6 = vpop.f32.mrf.mxu0  ;;  %v748_v7 = vpop.f32.mrf.mxu1 }
 0x325   : > { %v755_v8 = vadd.f32 %v748_v7, %v656_v5 }
 0x326   : > { %v1179_v9 = vpop.f32.mrf.mxu0  ;;  %v1184_v10 = vpop.f32.mrf.mxu1 }
 0x327   : > { %757 = vst.msk [vmem:[#allocation4 + $0x8] sm:$0xff] %vm495_vm0, %v755_v8 }
 0x328   : > { %v751_v11 = vpop.f32.mrf.mxu1 }
 0x32a   : > { %v1185_v12 = vpop.f32.mrf.mxu1  ;;  %v763_v13 = vld [vmem:[#allocation4] sm:$0xff] }
 0x32e   : > { %v764_v17 = vld [vmem:[#allocation4 + $0x8] sm:$0xff] }
 0x37c   : > { %v772_v14 = vpop.permute.xlu0 %771 }
 0x37d   : > { %v779_v15 = vmul.f32 %v772_v14, %v763_v13 }
 0x37f   : > { %v781_v16 = vpack.c.bf16 %v779_v15, %v779_v15 }
 0x380   : > { %v777_v18 = vpop.permute.xlu0 %776 }
 0x381   : > { %v780_v19 = vmul.f32 %v777_v18, %v764_v17  ;;  %1189 = vmatmul.mubr.msk.bf16.vlgmr.msra.gmra.mxu0 %vm495_vm0, %v781_v16 }
 0x383   : > { %v782_v20 = vpack.c.bf16 %v780_v19, %v780_v19 }
 0x385   : > { %1195 = vmatmul.mubr.msk.bf16.vlgmr.msra.gmra.mxu1 %vm495_vm0, %v782_v20 }
 0x441   : > { %v830_v21 = vpop.f32.mrf.mxu0 }
 0x442   : > { %v886_v25 = vsel %vm885_vm5, %v830_v21, 0.0 }
 0x443   : > { %v1190_v22 = vpop.f32.mrf.mxu0 }
 0x445   : > { %v833_v23 = vpop.f32.mrf.mxu0  ;;  %v879_v24 = vpop.f32.mrf.mxu1 }
 0x446   : > { %v887_v26 = vsel %vm885_vm5, %v879_v24, 0.0 }
 0x447   : > { %v888_v28 = vadd.f32 %v887_v26, %v886_v25  ;;  %v1191_v29 = vpop.f32.mrf.mxu0  ;;  %v1196_v30 = vpop.f32.mrf.mxu1 }
 0x449   : > { %v896_v32 = vadd.f32 %v1140_v27, %v888_v28  ;;  %v882_v33 = vpop.f32.mrf.mxu1 }
 0x44b   : > { %v1197_v34 = vpop.f32.mrf.mxu1  ;;  %v898_v35 = vadd.f32 %v897_v31, %v896_v32 }
 0x44d   : > { %v899_v36 = vsel %vm885_vm5, %v898_v35, 0.0 }
 0x44e   : > { %900 = vadd.xlane.f32.xlu1 %v899_v36 }
 0x4d7   : > { %v901_v37 = vpop.xlane.xlu1 %900 }
 0x4d8   : > { %v903_v38 = vmul.f32 0.03125, %v901_v37 }
 0x4da   : > { %v904_v39 = vsub.f32 %v898_v35, %v903_v38 }
 0x4dc   : > { %v905_v40 = vmul.f32 %v904_v39, %v904_v39 }
 0x4de   : > { %v906_v41 = vsel %vm885_vm5, %v905_v40, 0.0 }
 0x4df   : > { %907 = vadd.xlane.f32.xlu0 %v906_v41 }
 0x568   : > { %v908_v42 = vpop.xlane.xlu0 %907 }
 0x569   : > { %v909_v43 = vmul.f32 0.03125, %v908_v42 }
 0x56b   : > { %v910_v44 = vadd.f32 1e-05, %v909_v43 }
 0x56d   : > { %1308 = vrsqrt.f32 %v910_v44 }
 0x57a   : > { %v1309_v45 = vpop.eup %1308 }
 0x57b   : > { %v912_v47 = vmul.f32 %v1309_v45, %v904_v39 }
 0x57d   : > { %v920_v49 = vmul.f32 %v1141_v46, %v912_v47 }
 0x57f   : > { %v928_v50 = vadd.f32 %v1142_v48, %v920_v49 }
 0x581   : > { %929 = vst.msk [vmem:[%s484_s25] sm:$0xff] %vm885_vm5, %v928_v50 }
 0x582   : > { %1461 = shalt.err (!%p1458_p6)
}
 0x583   : > { %s1462_s8 = scalar_lea.hbm %s943_s17, 128  ;;  %s1466_s11 = scalar_lea.hbm %s1975_s7, 256 }
 0x584   : > { %p1463_p10 = scmp.ne.s32.totalorder %s943_s17, %s1462_s8  ;;  %p1467_p8 = scmp.lt.s32.totalorder %s943_s17, %s1975_s7 }
 0x585   : > { %p1468_p0 = scmp.lt.s32.totalorder %s1466_s11, %s1462_s8 }
 0x586   : > { %p1464_p11 = pnand %p1463_p10, %p1976_p7 }
 0x587   : > { %p1469_p1 = por %p1468_p0, %p1467_p8 }
 0x588   : > { %p1465_p13 = pneg %p1464_p11 }
 0x58a   : > { %p1470_p3 = pnand %p1469_p1, %p1465_p13 }
 0x58c   : > { %1473 = shalt.err (!%p1470_p3)
}
 0x58d   : > { %1210 = dma.vmem_to_hbm [thread:$0]  (%p1976_p7), %s946_s13, 128, %s943_s17, %s931_s18  }
 0x58e PF: > { %s1977_s1 = sld [smem:[#allocation20_spill]]  ;;  %p1980_p9 = scmp.ge.s32.totalorder %s1540_s10, 2 }
 0x58f   : > { %s1978_s20 = sld [smem:[#allocation22_spill]] }
 0x594   : > { %s957_s27 = sand.u32 1, %s1977_s1  }
 0x595   : > { %p1979_p12 = scmp.ne.s32.totalorder %s1978_s20, 0  ;;  %s958_s4 = scalar_lea.sflag [#allocation7], %s957_s27 }
 0x597   : > { %p1230_p5 = pnand %p1980_p9, %p1979_p12 }
 0x599   : > { %p1231_p4 = pneg %p1230_p5 }
 0x59b   : > { %1515 = dma.done.wait (%p1231_p4), %s958_s4, 128  }
 0x59c   : > { %1517 = vsyncadd (%p1231_p4), %s958_s4, 4294967168  ;;  %s30_s10 = sadd.s32 1, %s1540_s10   ;;  %s1981_s6 = sld [smem:[#allocation24_spill]] }
 0x59d   : > { %p27_p2 = scmp.ge.s32.totalorder %s30_s10, 4   ;;  %s1982_s30 = sld [smem:[#allocation21_spill]] }
 0x59e   : > { %s1983_s9 = sld [smem:[#allocation23_spill]]  ;;  %s1984_s27 = smov %s1524_s28 }
 0x59f   : > { %s1985_s28 = smov %s1528_s29  ;;  %29 = sbr.rel (!%p27_p2) target bundleno = 16 (0x10), region = 146 }
 0x5a2   : > { %s1986_s29 = smov %s1981_s6 }
 0x5a4   :  { %963 = vsyncpa [#allocation6], 1 }
 0x5a5   :  { %965 = vsyncpa [#allocation6 + $0x1], 1 }
 0x5a6   :  { %966 = vsyncpa [#allocation9], 1 }
 0x5a7   :  { %968 = vsyncpa [#allocation9 + $0x1], 1 }
 0x5a8   :  { %969 = vsyncpa [#allocation12], 1 }
 0x5a9   :  { %971 = vsyncpa [#allocation12 + $0x1], 1 }
 0x5aa   :  { %972 = vsyncpa [#allocation7], 1 }
 0x5ab   :  { %974 = vsyncpa [#allocation7 + $0x1], 1 }

// kernel: tpu_custom_call.1
= control target key start
LH: loop header
LB: loop body
LE: loop exit
PB: predicated region body
PF: predicated region fallthrough
CT: control target
= control target key end

     0   :  { %s1926_s0 = inlined_call_operand.hbm [shape: f32[2,8,32], index: 0, kind: input, shape index: {}]   ;;  %s1927_s1 = inlined_call_operand.hbm [shape: bf16[2,2,8,16], index: 1, kind: input, shape index: {}]   ;;  %s1928_s2 = inlined_call_operand.hbm [shape: bf16[2,2,8,16], index: 2, kind: input, shape index: {}]   ;;  %s1929_s3 = inlined_call_operand.hbm [shape: bf16[2,2,8,16], index: 3, kind: input, shape index: {}]   ;;  %s1930_s4 = inlined_call_operand.hbm [shape: bf16[2,16,32], index: 4, kind: input, shape index: {}]   ;;  %s1931_s5 = inlined_call_operand.vmem [shape: f32[1,32], index: 5, kind: input, shape index: {}]   ;;  %s1932_s6 = inlined_call_operand.vmem [shape: f32[1,32], index: 6, kind: input, shape index: {}]   ;;  %s1933_s7 = inlined_call_operand.vmem [shape: f32[1,32], index: 7, kind: input, shape index: {}]   ;;  %s1934_s8 = inlined_call_operand.hbm [shape: f32[2,8,32], index: 8, kind: output, shape index: {}]  }
   0x1   :  { %1947 = sst [smem:[#allocation25_spill]] %s1927_s1 }
   0x2   :  { %1948 = sst [smem:[#allocation26_spill]] %s1930_s4 }
   0x3   :  { %1949 = sst [smem:[#allocation27_spill]] %s1932_s6 }
   0x4   :  { %1950 = sst [smem:[#allocation28_spill]] %s1933_s7 }
   0x5   :  { %1951 = sst [smem:[#allocation29_spill]] %s1934_s8 }
   0x6   :  { %13 = vsyncpa [#allocation6], 0 }
   0x7   :  { %15 = vsyncpa [#allocation6 + $0x1], 0 }
   0x8   :  { %16 = vsyncpa [#allocation9], 0 }
   0x9   :  { %18 = vsyncpa [#allocation9 + $0x1], 0 }
   0xa   :  { %19 = vsyncpa [#allocation12], 0 }
   0xb   :  { %21 = vsyncpa [#allocation12 + $0x1], 0 }
   0xc   :  { %22 = vsyncpa [#allocation7], 0 }
   0xd   :  { %24 = vsyncpa [#allocation7 + $0x1], 0  ;;  %s1599_s27 = smov 0   ;;  %s1601_s28 = smov 0  }
   0xe   :  { %s1603_s29 = smov 0   ;;  %s1605_s30 = smov 0  }
   0xf   :  { %s1607_s9 = smov 0   ;;  %s1609_s10 = smov 0  }
  0x10 LB: > { %1952 = sst [smem:[#allocation20_spill]] %s1520_s27  ;;  %s1630_s11 = sadd.s32 4294967295, %s1540_s10   ;;  %s1540_s10 = sphi %s1609_s10, %s30_s10   ;;  %s1536_s9 = sphi %s1607_s9, %s1983_s9   ;;  %s1532_s30 = sphi %s1605_s30, %s1982_s30   ;;  %s1528_s29 = sphi %s1603_s29, %s1986_s29   ;;  %s1524_s28 = sphi %s1601_s28, %s1985_s28   ;;  %s1520_s27 = sphi %s1599_s27, %s1984_s27  }
  0x11   : > { %1953 = sst [smem:[#allocation21_spill]] %s1536_s9  ;;  %s1110_s12 = sadd.s32 4294967294, %s1540_s10  }
  0x12   : > { %p65_p0 = scmp.ne.s32.totalorder %s1528_s29, %s1524_s28  ;;  %p66_p1 = scmp.eq.s32.totalorder %s1540_s10, 0 }
  0x13   : > { %p71_p2 = scmp.ne.s32.totalorder %s1524_s28, %s1520_s27  ;;  %p72_p3 = scmp.eq.s32.totalorder %s1630_s11, 0 }
  0x14   : > { %p265_p4 = scmp.eq.s32.totalorder %s1630_s11, 1  ;;  %p1641_p5 = por %p66_p1, %p65_p0 }
  0x15   : > { %p271_p6 = scmp.eq.s32.totalorder %s1110_s12, 1  ;;  %p1647_p7 = por %p72_p3, %p71_p2 }
  0x16   : > { %p1651_p8 = por %p265_p4, %p65_p0  ;;  %p1111_p10 = scmp.ge.s32.totalorder %s1540_s10, 1 }
  0x17   : > { %p1655_p9 = por %p271_p6, %p71_p2  ;;  %p278_p11 = scmp.lt.s32.totalorder %s1540_s10, 3 }
  0x18   : > { %s1956_s16 = scalar_select %p1651_p8, 1, 0 }
  0x19   : > { %s1957_s17 = scalar_select %p1655_p9, 1, 0 }
  0x1a   : > { %p1661_p12 = pnand %p1111_p10, %p278_p11  ;;  %s1542_s19 = smov [#allocation13]  }
  0x1b   : > { %1958 = sst [smem:[#allocation22_spill]] %s1957_s17  ;;  %s290_s20 = sshll.u32 %s1542_s19, 4  ;;  %s291_s20 = int_to_ptr.vmem [resolvable:$true] %s290_s20 }
  0x1c   : > { %p1212_p13 = pneg %p1661_p12  ;;  %s49_s22 = sadd.s32 1, %s1536_s9 }
  0x1d   : > { %s1938_s23 = sand.u32 1, %s1528_s29   ;;  %p1677_p2 = scmp.ge.s32.totalorder %s49_s22, 2 }
  0x1e   : > { %p1671_p4 = pnand %p1212_p13, %p72_p3  ;;  %s1321_s25 = scalar_lea.vmem %s291_s20, 256 }
  0x1f   : > { %p1322_p10 = scmp.ne.s32.totalorder %s291_s20, %s1321_s25  ;;  %p1329_p0 = scmp.lt.s32.totalorder %s291_s20, %s291_s20 }
  0x20   : > { %p1312_p6 = pneg %p1671_p4  ;;  %p1330_p1 = scmp.lt.s32.totalorder %s1321_s25, %s1321_s25 }
  0x22   : > { %p1324_p11 = pnand %p1322_p10, %p1312_p6  ;;  %p1331_p8 = por %p1330_p1, %p1329_p0 }
  0x24   : > { %p1325_p9 = pneg %p1324_p11 }
  0x26   : > { %p1332_p13 = pnand %p1331_p8, %p1325_p9 }
  0x28   : > { %1335 = shalt.err (!%p1332_p13)
}
  0x29   : > { %s1939_s26 = smov 64   ;;  %s1941_s12 = smov 4  }
  0x2a   : > { %s1962_s4 = sld [smem:[#allocation26_spill]]  ;;  %s1988_s22 = smov (%p1677_p2, %s49_s22), 0 }
  0x2b   : > { %1963 = sst [smem:[#allocation23_spill]] %s1988_s22  ;;  %s1697_s13 = sshll.u32 %s1938_s23, 3 }
  0x2c   : > { %s1700_s17 = sshll.u32 %s1536_s9, 7  ;;  %s53_s27 = ssub.s32 %s1536_s9, %s1988_s22 }
  0x2d   : > { %p1964_p8 = scmp.lt.s32.totalorder %s1540_s10, 2  ;;  %p56_p0 = scmp.eq.s32.totalorder %s53_s27, 0 }
  0x2e   : > { %s1966_s24 = sadd.s32 1, %s1528_s29  ;;  %s1968_s1 = sld [smem:[#allocation25_spill]] }
  0x2f   : > { %p1708_p9 = pnand %p1964_p8, %p1641_p5  ;;  %s1545_s27 = smov [#allocation8]  }
  0x30   : > { %1215 = dma.hbm_to_vmem [thread:$0]  (!%p1671_p4), %s1962_s4, 256, %s291_s20, [#allocation12], %s1939_s26, %s1939_s26, %s1941_s12  }
  0x31   : > { %s1945_s20 = sand.u32 1, %s1540_s10   ;;  %s336_s12 = scalar_lea.vmem [#allocation8], %s1697_s13 }
  0x32   : > { %s1716_s19 = scalar_select %p56_p0, %s1528_s29, %s1966_s24  }
  0x33   : > { %s344_s4 = sshll.u32 %s336_s12, 4  ;;  %s1725_s14 = scalar_lea.sflag [#allocation9], %s1945_s20  ;;  %s345_s4 = int_to_ptr.vmem [resolvable:$true] %s344_s4 }
  0x34   : > { %1967 = sst [smem:[#allocation24_spill]] %s1716_s19  ;;  %s343_s26 = scalar_lea.hbm %s1968_s1, %s1700_s17 }
  0x35   : > { %p1338_p5 = pneg %p1708_p9  ;;  %s1349_s22 = scalar_lea.vmem %s345_s4, 128 }
  0x36   : > { %p1350_p1 = scmp.ne.s32.totalorder %s345_s4, %s1349_s22  ;;  %s1354_s24 = sshll.u32 %s1545_s27, 4  ;;  %s1355_s24 = int_to_ptr.vmem [resolvable:$false] %s1354_s24 }
  0x37   : > { %s1356_s9 = scalar_lea.vmem %s1355_s24, 256  ;;  %p1357_p6 = scmp.lt.s32.totalorder %s345_s4, %s1355_s24 }
  0x38   : > { %p1352_p4 = pnand %p1350_p1, %p1338_p5  ;;  %p1358_p10 = scmp.lt.s32.totalorder %s1356_s9, %s1349_s22 }
  0x3a   : > { %p1353_p2 = pneg %p1352_p4  ;;  %p1359_p11 = por %p1358_p10, %p1357_p6 }
  0x3c   : > { %p1360_p13 = pnand %p1359_p11, %p1353_p2 }
  0x3e   : > { %1363 = shalt.err (!%p1360_p13)
}
  0x3f   : > { %s1969_s23 = smov 4   ;;  %s1970_s12 = smov 64  }
  0x40   : > { %1222 = dma.hbm_to_vmem [thread:$0]  (!%p1708_p9), %s343_s26, 128, %s345_s4, %s1725_s14, %s1970_s12, %s1970_s12, %s1969_s23  }
  0x41   : > { %s323_s24 = scalar_lea.hbm %s1926_s0, %s1700_s17  ;;  %s317_s9 = scalar_lea.vmem [#allocation5], %s1697_s13 }
  0x42   : > { %s325_s22 = sshll.u32 %s317_s9, 4  ;;  %s365_s19 = scalar_lea.hbm %s1928_s2, %s1700_s17  ;;  %s326_s22 = int_to_ptr.vmem [resolvable:$true] %s325_s22 }
  0x43   : > { %s1971_s8 = sand.u32 1, %s1528_s29   ;;  %s1377_s6 = scalar_lea.vmem %s326_s22, 128 }
  0x44   : > { %s314_s7 = scalar_lea.sflag [#allocation6], %s1971_s8  ;;  %p1378_p8 = scmp.ne.s32.totalorder %s326_s22, %s1377_s6 }
  0x45   : > { %s1546_s4 = smov [#allocation5]  }
  0x46   : > { %p1380_p0 = pnand %p1378_p8, %p1338_p5  ;;  %s1382_s26 = sshll.u32 %s1546_s4, 4  ;;  %s1383_s26 = int_to_ptr.vmem [resolvable:$false] %s1382_s26 }
  0x47   : > { %s1384_s25 = scalar_lea.vmem %s1383_s26, 256  ;;  %p1385_p4 = scmp.lt.s32.totalorder %s326_s22, %s1383_s26 }
  0x48   : > { %p1381_p1 = pneg %p1380_p0  ;;  %p1386_p2 = scmp.lt.s32.totalorder %s1384_s25, %s1377_s6 }
  0x4a   : > { %p1387_p6 = por %p1386_p2, %p1385_p4 }
  0x4c   : > { %p1388_p10 = pnand %p1387_p6, %p1381_p1 }
  0x4e   : > { %1391 = shalt.err (!%p1388_p10)
}
  0x4f   : > { %1219 = dma.hbm_to_vmem [thread:$0]  (!%p1708_p9), %s323_s24, 128, %s326_s22, %s314_s7  }
  0x50   : > { %s358_s1 = scalar_lea.vmem [#allocation10], %s1697_s13  ;;  %s387_s9 = scalar_lea.hbm %s1929_s3, %s1700_s17 }
  0x51   : > { %s366_s8 = sshll.u32 %s358_s1, 4  ;;  %s1547_s6 = smov [#allocation10]   ;;  %s367_s8 = int_to_ptr.vmem [resolvable:$true] %s366_s8 }
  0x52   : > { %s1405_s4 = scalar_lea.vmem %s367_s8, 128  ;;  %s1410_s26 = sshll.u32 %s1547_s6, 4  ;;  %s1411_s26 = int_to_ptr.vmem [resolvable:$false] %s1410_s26 }
  0x53   : > { %p1406_p11 = scmp.ne.s32.totalorder %s367_s8, %s1405_s4  ;;  %s1412_s25 = scalar_lea.vmem %s1411_s26, 256 }
  0x54   : > { %p1413_p0 = scmp.lt.s32.totalorder %s367_s8, %s1411_s26  ;;  %p1414_p1 = scmp.lt.s32.totalorder %s1412_s25, %s1405_s4 }
  0x55   : > { %p1408_p13 = pnand %p1406_p11, %p1338_p5 }
  0x56   : > { %p1415_p4 = por %p1414_p1, %p1413_p0 }
  0x57   : > { %p1409_p8 = pneg %p1408_p13 }
  0x59   : > { %p1416_p2 = pnand %p1415_p4, %p1409_p8 }
  0x5b   : > { %1419 = shalt.err (!%p1416_p2)
}
  0x5c   : > { %1225 = dma.hbm_to_vmem [thread:$0]  (!%p1708_p9), %s365_s19, 128, %s367_s8, %s1725_s14, %s1970_s12, %s1970_s12, %s1969_s23  }
  0x5d   : > { %s380_s22 = scalar_lea.vmem [#allocation11], %s1697_s13  ;;  %s1972_s20 = sand.u32 1, %s1540_s10  }
  0x5e   : > { %s388_s1 = sshll.u32 %s380_s22, 4  ;;  %s377_s27 = scalar_lea.sflag [#allocation12], %s1972_s20  ;;  %s389_s1 = int_to_ptr.vmem [resolvable:$true] %s388_s1 }
  0x5f   : > { %s1433_s4 = scalar_lea.vmem %s389_s1, 128  ;;  %s1548_s6 = smov [#allocation11]  }
  0x60   : > { %p1434_p6 = scmp.ne.s32.totalorder %s389_s1, %s1433_s4  ;;  %s1438_s26 = sshll.u32 %s1548_s6, 4  ;;  %s1439_s26 = int_to_ptr.vmem [resolvable:$false] %s1438_s26 }
  0x61   : > { %s1440_s25 = scalar_lea.vmem %s1439_s26, 256  ;;  %p1441_p13 = scmp.lt.s32.totalorder %s389_s1, %s1439_s26 }
  0x62   : > { %p1436_p10 = pnand %p1434_p6, %p1338_p5  ;;  %p1442_p8 = scmp.lt.s32.totalorder %s1440_s25, %s1433_s4 }
  0x64   : > { %p1437_p11 = pneg %p1436_p10  ;;  %p1443_p0 = por %p1442_p8, %p1441_p13 }
  0x66   : > { %p1444_p1 = pnand %p1443_p0, %p1437_p11 }
  0x68   : > { %1447 = shalt.err (!%p1444_p1)
}
  0x69   : > { %1228 = dma.hbm_to_vmem [thread:$0]  (!%p1708_p9), %s387_s9, 128, %s389_s1, %s377_s27, %s1970_s12, %s1970_s12, %s1969_s23  }
  0x6a   : > { %400 = sbr.rel (%p1661_p12) target bundleno = 1422 (0x58e), region = 52  ;;  %s1792_s14 = sand.u32 (!%p1661_p12), 1, %s1524_s28  }
  0x6b   : > { %s1795_s8 = sshll.u32 (!%p1661_p12), %s1792_s14, 3  ;;  %s403_s21 = scalar_lea.sflag (!%p1661_p12), [#allocation6], %s1792_s14 }
  0x6c   : > { %s406_s7 = scalar_lea.vmem (!%p1661_p12), [#allocation5], %s1795_s8 }
  0x6f   : > { %1499 = dma.done.wait (%p1647_p7), %s403_s21, 128  }
  0x70   : > { %1501 = vsyncadd (%p1647_p7), %s403_s21, 4294967168  ;;  %s411_s17 = sand.u32 1, %s1630_s11   ;;  %s415_s23 = scalar_lea.vmem [#allocation8], %s1795_s8 }
  0x71   : > { %s412_s18 = scalar_lea.sflag [#allocation9], %s411_s17 }
  0x72   : > { %1503 = dma.done.wait (%p1647_p7), %s412_s18, 256  }
  0x73   : > { %1505 = vsyncadd (%p1647_p7), %s412_s18, 4294967040  ;;  %s424_s12 = scalar_lea.vmem [#allocation10], %s1795_s8  ;;  %s430_s9 = scalar_lea.sflag [#allocation12], %s411_s17 }
  0x74   : > { %s433_s24 = scalar_lea.vmem [#allocation11], %s1795_s8 }
  0x75   : > { %1507 = dma.done.wait (%p1647_p7), %s430_s9, 128  }
  0x76   : > { %1509 = vsyncadd (%p1647_p7), %s430_s9, 4294967168 }
  0x77   : > { %1511 = dma.done.wait (%p72_p3), [#allocation12], 256  }
  0x78   : > { %1513 = vsyncadd (%p72_p3), [#allocation12], 4294967040  ;;  %vm495_vm0 = vcmask 130048   ;;  %v1549_v0 = vmov 0.0   ;;  %vm1550_vm1 = vmmov 0   ;;  %vm490_vm2 = vcmask 7168  }
  0x79   : > { %1162 = vmatprep.subr.bf16.mxu0 %v1549_v0  ;;  %1168 = vmatprep.subr.bf16.mxu1 %v1549_v0  ;;  %496 = vst.msk [vmem:[#allocation4] sm:$0xff] %vm495_vm0, %v1549_v0  ;;  %497 = vst.msk [vmem:[#allocation4 + $0x8] sm:$0xff] %vm495_vm0, %v1549_v0  ;;  %v500_v1 = vld [vmem:[%s424_s12] sm:$0xf]  ;;  %v501_v2 = vld [vmem:[%s424_s12 + $0x4] sm:$0xf] }
  0x7a   : > { %1164 = vmatprep.mubr.msk.bf16.mxu0 %vm1550_vm1, %v1549_v0  ;;  %1170 = vmatprep.mubr.msk.bf16.mxu1 %vm1550_vm1, %v1549_v0  ;;  %v507_v3 = vsel %vm495_vm0, %v500_v1, 0  ;;  %v553_v4 = vsel %vm495_vm0, %v501_v2, 0  ;;  %v498_v5 = vld [vmem:[%s415_s23] sm:$0xf]  ;;  %v499_v6 = vld [vmem:[%s415_s23 + $0x4] sm:$0xf] }
  0x7b   : > { %1163 = vmatpush3.bf16.xpose.msra.mxu0 %v507_v3  ;;  %1169 = vmatpush3.bf16.xpose.msra.mxu1 %v553_v4  ;;  %v1551_v7 = vmov -1e+30   ;;  %493 = vst.msk [vmem:[#allocation3] sm:$0xff] %vm490_vm2, %v1549_v0  ;;  %494 = vst.msk [vmem:[#allocation3 + $0x8] sm:$0xff] %vm490_vm2, %v1549_v0  ;;  %vm597_vm3 = vcmask 64512   ;;  %v1552_v18 = vmov 0  }
  0x7c   : > { %1174 = vmatprep.subr.bf16.mxu0 %v1549_v0  ;;  %1180 = vmatprep.subr.bf16.mxu1 %v1549_v0  ;;  %491 = vst.msk [vmem:[#allocation2] sm:$0xff] %vm490_vm2, %v1551_v7  ;;  %492 = vst.msk [vmem:[#allocation2 + $0x8] sm:$0xff] %vm490_vm2, %v1551_v7  ;;  %v659_v27 = vld [vmem:[%s433_s24] sm:$0xf]  ;;  %vm664_vm4 = vcmask 1043456   ;;  %v1294_v57 = vld [vmem:[#allocation13] sm:$0xff]  }
  0x7d   : > { %1292 = vset.pattern.permute.xlu1 %v1552_v18  ;;  %1293 = vset.pattern.permute.xlu0 %v1552_v18  ;;  %v666_v28 = vsel %vm664_vm4, %v659_v27, 0  ;;  %v660_v29 = vld [vmem:[%s433_s24 + $0x4] sm:$0xf]  ;;  %v1295_v58 = vld [vmem:[#allocation13 + $0x8] sm:$0xff]   ;;  %vm885_vm5 = vcmask 261120   ;;  %s1973_s20 = sld [smem:[#allocation27_spill]] }
  0x7e   : > { %v712_v30 = vsel %vm664_vm4, %v660_v29, 0  ;;  %v1140_v27 = vld [vmem:[%s1931_s5] ss:$0 sm:$0xff]  ;;  %s1974_s6 = sld [smem:[#allocation28_spill]]  ;;  %s1144_s26 = sshll.u32 %s1532_s30, 7 }
  0x7f   : > { %s484_s25 = scalar_lea.vmem [#allocation14], %s1795_s8  ;;  %s931_s18 = scalar_lea.sflag [#allocation7], %s1792_s14 }
  0x80   : > { %v643_v61 = vld [vmem:[#allocation4] sm:$0xff]  ;;  %s945_s13 = sshll.u32 %s484_s25, 4  ;;  %p1976_p7 = scmp.ne.s32.totalorder %s1956_s16, 0  ;;  %s946_s13 = int_to_ptr.vmem [resolvable:$true] %s945_s13 }
  0x81   : > { %s1448_s23 = scalar_lea.vmem %s946_s13, 128  ;;  %s1553_s12 = smov [#allocation14]  }
  0x82   : > { %1165 = vmatmul.mubr.msk.bf16.vlgmr.msra.gmra.mxu0 %vm495_vm0, %v498_v5  ;;  %1171 = vmatmul.mubr.msk.bf16.vlgmr.msra.gmra.mxu1 %vm495_vm0, %v499_v6  ;;  %v628_v47 = vld [vmem:[#allocation3] sm:$0xff]  ;;  %v629_v50 = vld [vmem:[#allocation3 + $0x8] sm:$0xff]  ;;  %p1449_p3 = scmp.ne.s32.totalorder %s946_s13, %s1448_s23  ;;  %s1452_s9 = sshll.u32 %s1553_s12, 4  ;;  %s1453_s9 = int_to_ptr.vmem [resolvable:$false] %s1452_s9 }
  0x83   : > { %1176 = vmatprep.mubr.msk.bf16.mxu0 %vm1550_vm1, %v1549_v0  ;;  %1182 = vmatprep.mubr.msk.bf16.mxu1 %vm1550_vm1, %v1549_v0  ;;  %v595_v19 = vld [vmem:[#allocation2] sm:$0xff]  ;;  %v596_v22 = vld [vmem:[#allocation2 + $0x8] sm:$0xff]  ;;  %s1454_s30 = scalar_lea.vmem %s1453_s9, 256  ;;  %p1455_p5 = scmp.lt.s32.totalorder %s946_s13, %s1453_s9 }
  0x84   : > { %1175 = vmatpush3.bf16.msra.mxu0 %v666_v28  ;;  %1181 = vmatpush3.bf16.msra.mxu1 %v712_v30  ;;  %p1450_p12 = pnand %p1449_p3, %p1976_p7  ;;  %p1456_p4 = scmp.lt.s32.totalorder %s1454_s30, %s1448_s23 }
  0x85   : > { %1186 = vmatprep.subr.bf16.mxu0 %v1549_v0  ;;  %1192 = vmatprep.subr.bf16.mxu1 %v1549_v0 }
  0x86   : > { %p1451_p9 = pneg %p1450_p12  ;;  %p1457_p2 = por %p1456_p4, %p1455_p5 }
  0x88   : > { %p1458_p6 = pnand %p1457_p2, %p1451_p9 }
 0x142   : > { %v543_v8 = vpop.f32.mrf.mxu0  ;;  %v589_v9 = vpop.f32.mrf.mxu1 }
 0x143   : > { %v598_v10 = vsel %vm597_vm3, %v543_v8, -inf  ;;  %v601_v13 = vsel %vm597_vm3, %v589_v9, -inf }
 0x144   : > { %v1172_v11 = vpop.f32.mrf.mxu1  ;;  %599 = vmax.xlane.f32.xlu0 %v598_v10  ;;  %v1166_v12 = vpop.f32.mrf.mxu0 }
 0x146   : > { %v546_v14 = vpop.f32.mrf.mxu0  ;;  %v592_v15 = vpop.f32.mrf.mxu1 }
 0x148   : > { %v1173_v16 = vpop.f32.mrf.mxu1  ;;  %602 = vmax.xlane.f32.xlu0 %v601_v13  ;;  %v1167_v17 = vpop.f32.mrf.mxu0 }
 0x1cd   : > { %v600_v20 = vpop.xlane.xlu0 %599 }
 0x1ce   : > { %v604_v21 = vmax.f32 %v595_v19, %v600_v20 }
 0x1d0   : > { %v606_v23 = vsub.f32 %v595_v19, %v604_v21  ;;  %758 = vst.msk [vmem:[#allocation2] sm:$0xff] %vm490_vm2, %v604_v21  ;;  %614 = vperm.xlu1 %1292, %v604_v21  }
 0x1d1   : > { %v603_v24 = vpop.xlane.xlu0 %602 }
 0x1d2   : > { %v605_v25 = vmax.f32 %v596_v22, %v603_v24  ;;  %v608_v44 = vmul.f32 1.442695, %v606_v23 }
 0x1d4   : > { %v607_v26 = vsub.f32 %v596_v22, %v605_v25  ;;  %759 = vst.msk [vmem:[#allocation2 + $0x8] sm:$0xff] %vm490_vm2, %v605_v25  ;;  %619 = vperm.xlu1 %1292, %v605_v25  }
 0x1d6   : > { %v610_v41 = vmul.f32 1.442695, %v607_v26 }
 0x24b   : > { %v615_v31 = vpop.permute.xlu1 %614 }
 0x24c   : > { %v622_v32 = vsub.f32 %v543_v8, %v615_v31  ;;  %v897_v31 = vld [vmem:[%s406_s7] sm:$0xff]  ;;  %s1975_s7 = sld [smem:[#allocation29_spill]] }
 0x24e   : > { %v624_v33 = vmul.f32 1.442695, %v622_v32 }
 0x24f   : > { %v620_v34 = vpop.permute.xlu1 %619 }
 0x250   : > { %1296 = vpow2.f32 %v624_v33  ;;  %v623_v35 = vsub.f32 %v589_v9, %v620_v34 }
 0x252   : > { %v626_v36 = vmul.f32 1.442695, %v623_v35  ;;  %s943_s17 = scalar_lea.hbm %s1975_s7, %s1144_s26 }
 0x254   : > { %1298 = vpow2.f32 %v626_v36 }
 0x255   : > { %1300 = vpow2.f32 %v610_v41 }
 0x256   : > { %1302 = vpow2.f32 %v608_v44 }
 0x25d   : > { %v1297_v37 = vpop.eup %1296 }
 0x25e   : > { %v632_v38 = vsel %vm597_vm3, %v1297_v37, 0.0  ;;  %v657_v39 = vpack.c.bf16 %v1297_v37, %v1297_v37 }
 0x25f   : > { %633 = vadd.xlane.f32.xlu0 %v632_v38 }
 0x260   : > { %1177 = vmatmul.mubr.msk.bf16.vlgmr.msra.gmra.mxu0 %vm597_vm3, %v657_v39 }
 0x261   : > { %v1299_v40 = vpop.eup %1298  ;;  %1188 = vmatprep.mubr.msk.bf16.mxu0 %vm1550_vm1, %v1549_v0  ;;  %1187 = vmatpush3.bf16.msra.mxu0 %v1294_v57 }
 0x262   : > { %v635_v42 = vsel %vm597_vm3, %v1299_v40, 0.0  ;;  %v658_v43 = vpack.c.bf16 %v1299_v40, %v1299_v40  ;;  %v1301_v45 = vpop.eup %1300 }
 0x263   : > { %636 = vadd.xlane.f32.xlu1 %v635_v42  ;;  %v1303_v46 = vpop.eup %1302  ;;  %v631_v52 = vmul.f32 %v1301_v45, %v629_v50 }
 0x264   : > { %1183 = vmatmul.mubr.msk.bf16.vlgmr.msra.gmra.mxu1 %vm597_vm3, %v658_v43  ;;  %v630_v48 = vmul.f32 %v1303_v46, %v628_v47 }
 0x265   : > { %1194 = vmatprep.mubr.msk.bf16.mxu1 %vm1550_vm1, %v1549_v0  ;;  %1193 = vmatpush3.bf16.msra.mxu1 %v1295_v58  ;;  %v644_v0 = vld [vmem:[#allocation4 + $0x8] sm:$0xff] }
 0x274   : > { %652 = vperm.xlu1 %1292, %v1301_v45  }
 0x275   : > { %647 = vperm.xlu0 %1293, %v1303_v46   ;;  %v1141_v46 = vld [vmem:[%s1973_s20] ss:$0 sm:$0xff] }
 0x2e8   : > { %v634_v49 = vpop.xlane.xlu0 %633 }
 0x2e9   : > { %v638_v51 = vadd.f32 %v634_v49, %v630_v48  ;;  %v1142_v48 = vld [vmem:[%s1974_s6] ss:$0 sm:$0xff] }
 0x2eb   : > { %641 = vst.msk [vmem:[#allocation3] sm:$0xff] %vm490_vm2, %v638_v51 }
 0x2ec   : > { %v637_v53 = vpop.xlane.xlu1 %636 }
 0x2ed   : > { %v639_v54 = vadd.f32 %v637_v53, %v631_v52 }
 0x2ef   : > { %642 = vst.msk [vmem:[#allocation3 + $0x8] sm:$0xff] %vm490_vm2, %v639_v54 }
 0x2f0   : > { %v648_v62 = vpop.permute.xlu0 %647  ;;  %v653_v1 = vpop.permute.xlu1 %652 }
 0x2f1   : > { %v655_v63 = vmul.f32 %v648_v62, %v643_v61  ;;  %v656_v5 = vmul.f32 %v653_v1, %v644_v0 }
 0x2f2   : > { %v765_v55 = vld [vmem:[#allocation3] sm:$0xff] }
 0x2f3   : > { %1304 = vrcp.f32 %v765_v55 }
 0x2f6   : > { %v766_v56 = vld [vmem:[#allocation3 + $0x8] sm:$0xff] }
 0x2f7   : > { %1306 = vrcp.f32 %v766_v56 }
 0x300   : > { %v1305_v59 = vpop.eup %1304 }
 0x301   : > { %771 = vperm.xlu0 %1293, %v1305_v59  }
 0x304   : > { %v1307_v60 = vpop.eup %1306 }
 0x305   : > { %776 = vperm.xlu0 %1293, %v1307_v60  }
 0x320   : > { %v702_v2 = vpop.f32.mrf.mxu0 }
 0x321   : > { %v754_v3 = vadd.f32 %v702_v2, %v655_v63 }
 0x322   : > { %v1178_v4 = vpop.f32.mrf.mxu0 }
 0x323   : > { %756 = vst.msk [vmem:[#allocation4] sm:$0xff] %vm495_vm0, %v754_v3 }
 0x324   : > { %v705_v6 = vpop.f32.mrf.mxu0  ;;  %v748_v7 = vpop.f32.mrf.mxu1 }
 0x325   : > { %v755_v8 = vadd.f32 %v748_v7, %v656_v5 }
 0x326   : > { %v1179_v9 = vpop.f32.mrf.mxu0  ;;  %v1184_v10 = vpop.f32.mrf.mxu1 }
 0x327   : > { %757 = vst.msk [vmem:[#allocation4 + $0x8] sm:$0xff] %vm495_vm0, %v755_v8 }
 0x328   : > { %v751_v11 = vpop.f32.mrf.mxu1 }
 0x32a   : > { %v1185_v12 = vpop.f32.mrf.mxu1  ;;  %v763_v13 = vld [vmem:[#allocation4] sm:$0xff] }
 0x32e   : > { %v764_v17 = vld [vmem:[#allocation4 + $0x8] sm:$0xff] }
 0x37c   : > { %v772_v14 = vpop.permute.xlu0 %771 }
 0x37d   : > { %v779_v15 = vmul.f32 %v772_v14, %v763_v13 }
 0x37f   : > { %v781_v16 = vpack.c.bf16 %v779_v15, %v779_v15 }
 0x380   : > { %v777_v18 = vpop.permute.xlu0 %776 }
 0x381   : > { %v780_v19 = vmul.f32 %v777_v18, %v764_v17  ;;  %1189 = vmatmul.mubr.msk.bf16.vlgmr.msra.gmra.mxu0 %vm495_vm0, %v781_v16 }
 0x383   : > { %v782_v20 = vpack.c.bf16 %v780_v19, %v780_v19 }
 0x385   : > { %1195 = vmatmul.mubr.msk.bf16.vlgmr.msra.gmra.mxu1 %vm495_vm0, %v782_v20 }
 0x441   : > { %v830_v21 = vpop.f32.mrf.mxu0 }
 0x442   : > { %v886_v25 = vsel %vm885_vm5, %v830_v21, 0.0 }
 0x443   : > { %v1190_v22 = vpop.f32.mrf.mxu0 }
 0x445   : > { %v833_v23 = vpop.f32.mrf.mxu0  ;;  %v879_v24 = vpop.f32.mrf.mxu1 }
 0x446   : > { %v887_v26 = vsel %vm885_vm5, %v879_v24, 0.0 }
 0x447   : > { %v888_v28 = vadd.f32 %v887_v26, %v886_v25  ;;  %v1191_v29 = vpop.f32.mrf.mxu0  ;;  %v1196_v30 = vpop.f32.mrf.mxu1 }
 0x449   : > { %v896_v32 = vadd.f32 %v1140_v27, %v888_v28  ;;  %v882_v33 = vpop.f32.mrf.mxu1 }
 0x44b   : > { %v1197_v34 = vpop.f32.mrf.mxu1  ;;  %v898_v35 = vadd.f32 %v897_v31, %v896_v32 }
 0x44d   : > { %v899_v36 = vsel %vm885_vm5, %v898_v35, 0.0 }
 0x44e   : > { %900 = vadd.xlane.f32.xlu1 %v899_v36 }
 0x4d7   : > { %v901_v37 = vpop.xlane.xlu1 %900 }
 0x4d8   : > { %v903_v38 = vmul.f32 0.03125, %v901_v37 }
 0x4da   : > { %v904_v39 = vsub.f32 %v898_v35, %v903_v38 }
 0x4dc   : > { %v905_v40 = vmul.f32 %v904_v39, %v904_v39 }
 0x4de   : > { %v906_v41 = vsel %vm885_vm5, %v905_v40, 0.0 }
 0x4df   : > { %907 = vadd.xlane.f32.xlu0 %v906_v41 }
 0x568   : > { %v908_v42 = vpop.xlane.xlu0 %907 }
 0x569   : > { %v909_v43 = vmul.f32 0.03125, %v908_v42 }
 0x56b   : > { %v910_v44 = vadd.f32 1e-05, %v909_v43 }
 0x56d   : > { %1308 = vrsqrt.f32 %v910_v44 }
 0x57a   : > { %v1309_v45 = vpop.eup %1308 }
 0x57b   : > { %v912_v47 = vmul.f32 %v1309_v45, %v904_v39 }
 0x57d   : > { %v920_v49 = vmul.f32 %v1141_v46, %v912_v47 }
 0x57f   : > { %v928_v50 = vadd.f32 %v1142_v48, %v920_v49 }
 0x581   : > { %929 = vst.msk [vmem:[%s484_s25] sm:$0xff] %vm885_vm5, %v928_v50 }
 0x582   : > { %1461 = shalt.err (!%p1458_p6)
}
 0x583   : > { %s1462_s8 = scalar_lea.hbm %s943_s17, 128  ;;  %s1466_s11 = scalar_lea.hbm %s1975_s7, 256 }
 0x584   : > { %p1463_p10 = scmp.ne.s32.totalorder %s943_s17, %s1462_s8  ;;  %p1467_p8 = scmp.lt.s32.totalorder %s943_s17, %s1975_s7 }
 0x585   : > { %p1468_p0 = scmp.lt.s32.totalorder %s1466_s11, %s1462_s8 }
 0x586   : > { %p1464_p11 = pnand %p1463_p10, %p1976_p7 }
 0x587   : > { %p1469_p1 = por %p1468_p0, %p1467_p8 }
 0x588   : > { %p1465_p13 = pneg %p1464_p11 }
 0x58a   : > { %p1470_p3 = pnand %p1469_p1, %p1465_p13 }
 0x58c   : > { %1473 = shalt.err (!%p1470_p3)
}
 0x58d   : > { %1210 = dma.vmem_to_hbm [thread:$0]  (%p1976_p7), %s946_s13, 128, %s943_s17, %s931_s18  }
 0x58e PF: > { %s1977_s1 = sld [smem:[#allocation20_spill]]  ;;  %p1980_p9 = scmp.ge.s32.totalorder %s1540_s10, 2 }
 0x58f   : > { %s1978_s20 = sld [smem:[#allocation22_spill]] }
 0x594   : > { %s957_s27 = sand.u32 1, %s1977_s1  }
 0x595   : > { %p1979_p12 = scmp.ne.s32.totalorder %s1978_s20, 0  ;;  %s958_s4 = scalar_lea.sflag [#allocation7], %s957_s27 }
 0x597   : > { %p1230_p5 = pnand %p1980_p9, %p1979_p12 }
 0x599   : > { %p1231_p4 = pneg %p1230_p5 }
 0x59b   : > { %1515 = dma.done.wait (%p1231_p4), %s958_s4, 128  }
 0x59c   : > { %1517 = vsyncadd (%p1231_p4), %s958_s4, 4294967168  ;;  %s30_s10 = sadd.s32 1, %s1540_s10   ;;  %s1981_s6 = sld [smem:[#allocation24_spill]] }
 0x59d   : > { %p27_p2 = scmp.ge.s32.totalorder %s30_s10, 4   ;;  %s1982_s30 = sld [smem:[#allocation21_spill]] }
 0x59e   : > { %s1983_s9 = sld [smem:[#allocation23_spill]]  ;;  %s1984_s27 = smov %s1524_s28 }
 0x59f   : > { %s1985_s28 = smov %s1528_s29  ;;  %29 = sbr.rel (!%p27_p2) target bundleno = 16 (0x10), region = 146 }
 0x5a2   : > { %s1986_s29 = smov %s1981_s6 }
 0x5a4   :  { %963 = vsyncpa [#allocation6], 1 }
 0x5a5   :  { %965 = vsyncpa [#allocation6 + $0x1], 1 }
 0x5a6   :  { %966 = vsyncpa [#allocation9], 1 }
 0x5a7   :  { %968 = vsyncpa [#allocation9 + $0x1], 1 }
 0x5a8   :  { %969 = vsyncpa [#allocation12], 1 }
 0x5a9   :  { %971 = vsyncpa [#allocation12 + $0x1], 1 }
 0x5aa   :  { %972 = vsyncpa [#allocation7], 1 }
 0x5ab   :  { %974 = vsyncpa [#allocation7 + $0x1], 1 }

</bundles_post_ra>
